<compile_context>
chip_gen: v7x
topology: tpu7x:2x2x1
jax: 0.10.0
libtpu: 0.0.40
codegen_flags: <defaults>
</compile_context>

<pallas_src>
import functools

import jax
import jax.numpy as jnp
from jax.experimental import pallas as pl
from jax.experimental.pallas import tpu as pltpu

_LN_EPS = 1e-5


def _layer_norm(x, gamma, beta, eps=_LN_EPS):
    mean = jnp.mean(x, axis=-1, keepdims=True)
    c = x - mean
    var = jnp.mean(c * c, axis=-1, keepdims=True)
    inv = jax.lax.rsqrt(var + eps)
    return c * inv * gamma + beta


def _vmem_limit_bytes():
    """Generation-aware scoped-VMEM limit (v5e/v6e: 128 MiB, v7x: 64 MiB)."""
    cap = None
    try:
        info = pltpu.get_tpu_info()
        cap = int(getattr(info, "vmem_capacity_bytes", 0)) or None
    except Exception:
        cap = None
    if cap is None:
        cap = 64 * 1024 * 1024  # conservative fallback (safe on all generations)
    return int(min(max(cap - 16 * 1024 * 1024, 32 * 1024 * 1024), 96 * 1024 * 1024))


def _transformer_block_kernel(
    x_ref,                       # (Bt, S, D_in)  batch tile
    w_in_ref, b_in_ref,          # (D_in, D), (1, D)
    w_qkv_ref, b_qkv_ref,        # (D, 3D),  (1, 3D)   (Q columns pre-scaled)
    w_o_ref, b_o_ref,            # (D, D),   (1, D)
    ln1_g_ref, ln1_b_ref,        # (1, D)
    w_ff1_ref, b_ff1_ref,        # (D, Dff), (1, Dff)
    w_ff2_ref, b_ff2_ref,        # (Dff, D), (1, D)
    ln2_g_ref, ln2_b_ref,        # (1, D)
    lnf_g_ref, lnf_b_ref,        # (1, D)
    o_ref,                       # (Bt, S, D)
    *,
    num_heads, head_dim,
):
    f32 = jnp.float32
    bt, seq, d_in = x_ref.shape
    d_model = num_heads * head_dim
    rows = bt * seq

    def matmul(a, w_ref, b_ref=None):
        # Cast activations to the streamed weight dtype (bf16 supported),
        # accumulate in f32 on the MXU.
        w = w_ref[...]
        out = jnp.dot(a.astype(w.dtype), w, preferred_element_type=f32)
        if b_ref is not None:
            out = out + b_ref[...].astype(f32)
        return out

    # Flatten (Bt, S) -> rows so the MXU sees M = Bt*S for every projection.
    x = x_ref[...].reshape(rows, d_in).astype(f32)

    # ---- input_proj: Linear(D_in, D) ---------------------------------------
    h0 = matmul(x, w_in_ref, b_in_ref)                         # (rows, D)

    # ---- fused QKV projection (1/sqrt(hd) already folded into Q columns) ----
    qkv = matmul(h0, w_qkv_ref, b_qkv_ref)                     # (rows, 3D)
    q = qkv[:, :d_model].reshape(bt, seq, d_model)
    k = qkv[:, d_model:2 * d_model].reshape(bt, seq, d_model)
    v = qkv[:, 2 * d_model:].reshape(bt, seq, d_model)

    # ---- self-attention, batched over Bt -----------------------------------
    head_outs = []
    for h in range(num_heads):                                 # static unroll (small H)
        lo = h * head_dim
        hi = lo + head_dim
        q_h = q[:, :, lo:hi]                                   # (Bt, S, hd)
        k_h = k[:, :, lo:hi]
        v_h = v[:, :, lo:hi]
        s = jnp.einsum("bqd,bkd->bqk", q_h, k_h,
                       preferred_element_type=f32)             # (Bt, S, S)
        s = s - jnp.max(s, axis=-1, keepdims=True)
        p = jnp.exp(s)
        p = p * pl.reciprocal(jnp.sum(p, axis=-1, keepdims=True), approx=True)
        o_h = jnp.einsum("bqk,bkd->bqd", p, v_h,
                         preferred_element_type=f32)           # (Bt, S, hd)
        head_outs.append(o_h.reshape(rows, head_dim))

    o_cat = head_outs[0] if num_heads == 1 else jnp.concatenate(head_outs, axis=-1)
    attn = matmul(o_cat, w_o_ref, b_o_ref)                     # single K=D out-proj

    # ---- residual + norm1 ----------------------------------------------------
    h1 = _layer_norm(h0 + attn,
                     ln1_g_ref[...].astype(f32), ln1_b_ref[...].astype(f32))

    # ---- feed-forward: Linear -> ReLU -> Linear ------------------------------
    ff = matmul(h1, w_ff1_ref, b_ff1_ref)                      # (rows, Dff)
    ff = jnp.maximum(ff, 0.0)
    ff = matmul(ff, w_ff2_ref, b_ff2_ref)                      # (rows, D)

    # ---- residual + norm2, then the block's final LayerNorm ------------------
    h2 = _layer_norm(h1 + ff,
                     ln2_g_ref[...].astype(f32), ln2_b_ref[...].astype(f32))
    out = _layer_norm(h2,
                      lnf_g_ref[...].astype(f32), lnf_b_ref[...].astype(f32))

    o_ref[...] = out.reshape(bt, seq, d_model).astype(o_ref.dtype)


def transformer_block_forward(x, kparams, *, num_heads, block_b=None,
                              single_buffer_weights=False, out_dtype=jnp.float32):
    """x: (B, S, D_in) f32. kparams from prepare_kernel_params (weights stored as
    (in_features, out_features); Q columns of w_qkv/b_qkv pre-scaled)."""
    B, S, d_in = x.shape
    d_model = kparams["w_in"].shape[1]
    d_ff = kparams["w_ff1"].shape[1]
    assert d_model % num_heads == 0
    head_dim = d_model // num_heads

    # Batch tile: target >= 256 flattened rows per grid step (fills the MXU M dim
    # on v6e/v7x; >= 128 suffices on v5e), capped by the actual batch size.
    if block_b is None:
        block_b = min(B, max(1, pl.cdiv(256, S)))
    num_blocks = pl.cdiv(B, block_b)
    b_pad = num_blocks * block_b
    if b_pad != B:
        x = jnp.pad(x, ((0, b_pad - B), (0, 0), (0, 0)))

    kernel = functools.partial(_transformer_block_kernel,
                               num_heads=num_heads, head_dim=head_dim)

    weight_kwargs = {}
    if single_buffer_weights:
        # Constant-index weights need no double buffering; halves weight VMEM
        # (keeps whole-weight residency viable on v7x at large d_model).
        weight_kwargs = dict(pipeline_mode=pl.Buffered(1))

    def whole(shape):
        # Whole-array weight block, constant block index: fetched once, then
        # VMEM-resident across the batch grid.
        return pl.BlockSpec(shape, lambda i: (0,) * len(shape), **weight_kwargs)

    rows_total = b_pad * S
    weight_bytes = sum(int(v.size) * jnp.dtype(v.dtype).itemsize
                       for v in kparams.values())
    flops = (2 * rows_total * (d_in * d_model + d_model * 3 * d_model
                               + d_model * d_model + 2 * d_model * d_ff)
             + 4 * rows_total * S * d_model)
    cost = pl.CostEstimate(
        flops=int(flops),
        transcendentals=int(rows_total * S * num_heads),
        bytes_accessed=int(weight_bytes
                           + int(x.size) * x.dtype.itemsize
                           + rows_total * d_model * jnp.dtype(out_dtype).itemsize),
    )

    out = pl.pallas_call(
        kernel,
        out_shape=jax.ShapeDtypeStruct((b_pad, S, d_model), out_dtype),
        grid=(num_blocks,),
        in_specs=[
            pl.BlockSpec((block_b, S, d_in), lambda i: (i, 0, 0)),    # x tile
            whole((d_in, d_model)), whole((1, d_model)),              # input_proj
            whole((d_model, 3 * d_model)), whole((1, 3 * d_model)),   # qkv proj
            whole((d_model, d_model)), whole((1, d_model)),           # out proj
            whole((1, d_model)), whole((1, d_model)),                 # norm1
            whole((d_model, d_ff)), whole((1, d_ff)),                 # ff linear1
            whole((d_ff, d_model)), whole((1, d_model)),              # ff linear2
            whole((1, d_model)), whole((1, d_model)),                 # norm2
            whole((1, d_model)), whole((1, d_model)),                 # final norm
        ],
        out_specs=pl.BlockSpec((block_b, S, d_model), lambda i: (i, 0, 0)),
        compiler_params=pltpu.CompilerParams(
            dimension_semantics=("parallel",),          # megacore over batch tiles
            vmem_limit_bytes=_vmem_limit_bytes(),
        ),
        cost_estimate=cost,
    )(
        x,
        kparams["w_in"], kparams["b_in"],
        kparams["w_qkv"], kparams["b_qkv"],
        kparams["w_o"], kparams["b_o"],
        kparams["ln1_g"], kparams["ln1_b"],
        kparams["w_ff1"], kparams["b_ff1"],
        kparams["w_ff2"], kparams["b_ff2"],
        kparams["ln2_g"], kparams["ln2_b"],
        kparams["lnf_g"], kparams["lnf_b"],
    )
    return out[:B] if b_pad != B else out


def init_params(key, d_in, d_model, ff_multiplier=4, dtype=jnp.float32):
    """Uniform init mimicking nn.Linear; dtype=jnp.bfloat16 enables bf16 weight
    streaming (kernel still accumulates in f32)."""
    d_ff = d_model * ff_multiplier
    ks = jax.random.split(key, 10)

    def lin(k, fan_in, shape):
        bound = 1.0 / jnp.sqrt(fan_in)
        return jax.random.uniform(k, shape, jnp.float32, -bound, bound).astype(dtype)

    return {
        "w_in":  lin(ks[0], d_in, (d_in, d_model)),
        "b_in":  lin(ks[1], d_in, (1, d_model)),
        "w_qkv": lin(ks[2], d_model, (d_model, 3 * d_model)),
        "b_qkv": lin(ks[3], d_model, (1, 3 * d_model)),
        "w_o":   lin(ks[4], d_model, (d_model, d_model)),
        "b_o":   lin(ks[5], d_model, (1, d_model)),
        "w_ff1": lin(ks[6], d_model, (d_model, d_ff)),
        "b_ff1": lin(ks[7], d_model, (1, d_ff)),
        "w_ff2": lin(ks[8], d_ff, (d_ff, d_model)),
        "b_ff2": lin(ks[9], d_ff, (1, d_model)),
        "ln1_g": jnp.ones((1, d_model), dtype), "ln1_b": jnp.zeros((1, d_model), dtype),
        "ln2_g": jnp.ones((1, d_model), dtype), "ln2_b": jnp.zeros((1, d_model), dtype),
        "lnf_g": jnp.ones((1, d_model), dtype), "lnf_b": jnp.zeros((1, d_model), dtype),
    }


def prepare_kernel_params(params, *, num_heads):
    """Fold the 1/sqrt(head_dim) attention scale into the Q columns of the
    fused QKV projection (one-time, outside the hot path)."""
    d_model = params["w_in"].shape[1]
    head_dim = d_model // num_heads
    scale = 1.0 / float(head_dim) ** 0.5
    col_scale = jnp.concatenate([
        jnp.full((d_model,), scale, jnp.float32),
        jnp.ones((2 * d_model,), jnp.float32),
    ])
    kp = dict(params)
    kp["w_qkv"] = (params["w_qkv"].astype(jnp.float32)
                   * col_scale[None, :]).astype(params["w_qkv"].dtype)
    kp["b_qkv"] = (params["b_qkv"].astype(jnp.float32)
                   * col_scale[None, :]).astype(params["b_qkv"].dtype)
    return kp


def reference_forward(x, p, num_heads):
    """Pure-JAX reference matching the PyTorch post-norm TransformerEncoderLayer."""
    def ln(a, g, b, eps=_LN_EPS):
        m = jnp.mean(a, axis=-1, keepdims=True)
        c = a - m
        v = jnp.mean(c * c, axis=-1, keepdims=True)
        return c / jnp.sqrt(v + eps) * g + b

    B, S, _ = x.shape
    d_model = p["w_in"].shape[1]
    hd = d_model // num_heads

    h0 = x @ p["w_in"].astype(jnp.float32) + p["b_in"].astype(jnp.float32)
    qkv = h0 @ p["w_qkv"].astype(jnp.float32) + p["b_qkv"].astype(jnp.float32)
    q, k, v = (qkv[..., :d_model], qkv[..., d_model:2 * d_model], qkv[..., 2 * d_model:])

    def heads(t):
        return t.reshape(B, S, num_heads, hd).transpose(0, 2, 1, 3)

    qh, kh, vh = heads(q), heads(k), heads(v)
    s = jnp.einsum("bhqd,bhkd->bhqk", qh, kh) / jnp.sqrt(hd)
    a = jax.nn.softmax(s, axis=-1)
    o = jnp.einsum("bhqk,bhkd->bhqd", a, vh).transpose(0, 2, 1, 3).reshape(B, S, d_model)
    attn = o @ p["w_o"].astype(jnp.float32) + p["b_o"].astype(jnp.float32)

    h1 = ln(h0 + attn, p["ln1_g"], p["ln1_b"])
    ff = jnp.maximum(h1 @ p["w_ff1"].astype(jnp.float32) + p["b_ff1"].astype(jnp.float32), 0.0)
    ff = ff @ p["w_ff2"].astype(jnp.float32) + p["b_ff2"].astype(jnp.float32)
    h2 = ln(h1 + ff, p["ln2_g"], p["ln2_b"])
    return ln(h2, p["lnf_g"], p["lnf_b"])


if __name__ == "__main__":
    key = jax.random.PRNGKey(0)
    k_x, k_p = jax.random.split(key)

    # Small shapes consistent with the module: nhead = min(8, d_model_out // 64).
    B, S, D_IN, D_MODEL = 2, 8, 32, 128
    NHEAD = min(8, D_MODEL // 64)          # = 2 heads, head_dim = 64

    x = jax.random.normal(k_x, (B, S, D_IN), dtype=jnp.float32)
    params = init_params(k_p, D_IN, D_MODEL)
    kparams = prepare_kernel_params(params, num_heads=NHEAD)

    # Default path: batch tile covers the whole (tiny) batch, grid=(1,).
    out = jax.block_until_ready(
        transformer_block_forward(x, kparams, num_heads=NHEAD))

    # Also exercise the multi-step grid path (block_b=1 -> grid=(2,), parallel axis).
    out_tiled = jax.block_until_ready(
        transformer_block_forward(x, kparams, num_heads=NHEAD, block_b=1))

    with jax.default_matmul_precision("highest"):
        ref = reference_forward(x, params, NHEAD)

    assert out.shape == (B, S, D_MODEL)
    for got, name in ((out, "batched"), (out_tiled, "tiled")):
        max_diff = float(jnp.max(jnp.abs(got - ref)))
        assert jnp.allclose(got, ref, atol=1e-2, rtol=1e-2), \
            f"{name}: max abs diff = {max_diff}"

    print("KERNEL_OK")
</pallas_src>

<mosaic_0001>
module attributes {stable_mosaic.version = 11 : i64} {
  func.func @_transformer_block_kernel(%arg0: i32, %arg1: memref<2x8x32xf32, #tpu.memory_space<vmem>>, %arg2: memref<32x128xf32, #tpu.memory_space<vmem>>, %arg3: memref<1x128xf32, #tpu.memory_space<vmem>>, %arg4: memref<128x384xf32, #tpu.memory_space<vmem>>, %arg5: memref<1x384xf32, #tpu.memory_space<vmem>>, %arg6: memref<128x128xf32, #tpu.memory_space<vmem>>, %arg7: memref<1x128xf32, #tpu.memory_space<vmem>>, %arg8: memref<1x128xf32, #tpu.memory_space<vmem>>, %arg9: memref<1x128xf32, #tpu.memory_space<vmem>>, %arg10: memref<128x512xf32, #tpu.memory_space<vmem>>, %arg11: memref<1x512xf32, #tpu.memory_space<vmem>>, %arg12: memref<512x128xf32, #tpu.memory_space<vmem>>, %arg13: memref<1x128xf32, #tpu.memory_space<vmem>>, %arg14: memref<1x128xf32, #tpu.memory_space<vmem>>, %arg15: memref<1x128xf32, #tpu.memory_space<vmem>>, %arg16: memref<1x128xf32, #tpu.memory_space<vmem>>, %arg17: memref<1x128xf32, #tpu.memory_space<vmem>>, %arg18: memref<2x8x128xf32, #tpu.memory_space<vmem>>) attributes {dimension_semantics = [#tpu.dimension_semantics<parallel>], iteration_bounds = array<i64: 1>, scalar_prefetch = 0 : i64, scratch_operands = 0 : i64, tpu.core_type = #tpu.core_type<tc>, window_params = [{transform_indices = @transform_0, window_bounds = array<i64: 2, 8, 32>}, {pipeline_mode = #tpu.pipeline_mode<synchronous>, transform_indices = @transform_1, window_bounds = array<i64: 32, 128>}, {pipeline_mode = #tpu.pipeline_mode<synchronous>, transform_indices = @transform_2, window_bounds = array<i64: 1, 128>}, {pipeline_mode = #tpu.pipeline_mode<synchronous>, transform_indices = @transform_3, window_bounds = array<i64: 128, 384>}, {pipeline_mode = #tpu.pipeline_mode<synchronous>, transform_indices = @transform_4, window_bounds = array<i64: 1, 384>}, {pipeline_mode = #tpu.pipeline_mode<synchronous>, transform_indices = @transform_5, window_bounds = array<i64: 128, 128>}, {pipeline_mode = #tpu.pipeline_mode<synchronous>, transform_indices = @transform_6, window_bounds = array<i64: 1, 128>}, {pipeline_mode = #tpu.pipeline_mode<synchronous>, transform_indices = @transform_7, window_bounds = array<i64: 1, 128>}, {pipeline_mode = #tpu.pipeline_mode<synchronous>, transform_indices = @transform_8, window_bounds = array<i64: 1, 128>}, {pipeline_mode = #tpu.pipeline_mode<synchronous>, transform_indices = @transform_9, window_bounds = array<i64: 128, 512>}, {pipeline_mode = #tpu.pipeline_mode<synchronous>, transform_indices = @transform_10, window_bounds = array<i64: 1, 512>}, {pipeline_mode = #tpu.pipeline_mode<synchronous>, transform_indices = @transform_11, window_bounds = array<i64: 512, 128>}, {pipeline_mode = #tpu.pipeline_mode<synchronous>, transform_indices = @transform_12, window_bounds = array<i64: 1, 128>}, {pipeline_mode = #tpu.pipeline_mode<synchronous>, transform_indices = @transform_13, window_bounds = array<i64: 1, 128>}, {pipeline_mode = #tpu.pipeline_mode<synchronous>, transform_indices = @transform_14, window_bounds = array<i64: 1, 128>}, {pipeline_mode = #tpu.pipeline_mode<synchronous>, transform_indices = @transform_15, window_bounds = array<i64: 1, 128>}, {pipeline_mode = #tpu.pipeline_mode<synchronous>, transform_indices = @transform_16, window_bounds = array<i64: 1, 128>}, {transform_indices = @transform_17, window_bounds = array<i64: 2, 8, 128>}]} {
    %c0 = arith.constant 0 : index
    %c0_0 = arith.constant 0 : index
    %c0_1 = arith.constant 0 : index
    %0 = vector.load %arg1[%c0, %c0_0, %c0_1] : memref<2x8x32xf32, #tpu.memory_space<vmem>>, vector<2x8x32xf32>
    %1 = vector.shape_cast %0 : vector<2x8x32xf32> to vector<16x32xf32>
    %c0_2 = arith.constant 0 : index
    %c0_3 = arith.constant 0 : index
    %2 = vector.load %arg2[%c0_2, %c0_3] : memref<32x128xf32, #tpu.memory_space<vmem>>, vector<32x128xf32>
    %cst = arith.constant dense<0.000000e+00> : vector<16x128xf32>
    %3 = tpu.matmul %1, %2, %cst {dimension_numbers = #tpu.dot_dimension_numbers<[1], [0], [0], [1], [0, 0, 1, 1], [], []>} : vector<16x32xf32>, vector<32x128xf32>, vector<16x128xf32> -> vector<16x128xf32>
    %c0_4 = arith.constant 0 : index
    %c0_5 = arith.constant 0 : index
    %4 = vector.load %arg3[%c0_4, %c0_5] : memref<1x128xf32, #tpu.memory_space<vmem>>, vector<1x128xf32>
    %5 = vector.broadcast %4 : vector<1x128xf32> to vector<16x128xf32>
    %6 = arith.addf %3, %5 : vector<16x128xf32>
    %c0_6 = arith.constant 0 : index
    %c0_7 = arith.constant 0 : index
    %7 = vector.load %arg4[%c0_6, %c0_7] : memref<128x384xf32, #tpu.memory_space<vmem>>, vector<128x384xf32>
    %cst_8 = arith.constant dense<0.000000e+00> : vector<16x384xf32>
    %8 = tpu.matmul %6, %7, %cst_8 {dimension_numbers = #tpu.dot_dimension_numbers<[1], [0], [0], [1], [0, 0, 1, 1], [], []>} : vector<16x128xf32>, vector<128x384xf32>, vector<16x384xf32> -> vector<16x384xf32>
    %c0_9 = arith.constant 0 : index
    %c0_10 = arith.constant 0 : index
    %9 = vector.load %arg5[%c0_9, %c0_10] : memref<1x384xf32, #tpu.memory_space<vmem>>, vector<1x384xf32>
    %10 = vector.broadcast %9 : vector<1x384xf32> to vector<16x384xf32>
    %11 = arith.addf %8, %10 : vector<16x384xf32>
    %12 = vector.extract_strided_slice %11 {offsets = [0, 0], sizes = [16, 128], strides = [1, 1]} : vector<16x384xf32> to vector<16x128xf32>
    %13 = vector.shape_cast %12 : vector<16x128xf32> to vector<2x8x128xf32>
    %14 = vector.extract_strided_slice %11 {offsets = [0, 128], sizes = [16, 128], strides = [1, 1]} : vector<16x384xf32> to vector<16x128xf32>
    %15 = vector.shape_cast %14 : vector<16x128xf32> to vector<2x8x128xf32>
    %16 = vector.extract_strided_slice %11 {offsets = [0, 256], sizes = [16, 128], strides = [1, 1]} : vector<16x384xf32> to vector<16x128xf32>
    %17 = vector.shape_cast %16 : vector<16x128xf32> to vector<2x8x128xf32>
    %18 = vector.extract_strided_slice %13 {offsets = [0, 0, 0], sizes = [2, 8, 64], strides = [1, 1, 1]} : vector<2x8x128xf32> to vector<2x8x64xf32>
    %19 = vector.extract_strided_slice %15 {offsets = [0, 0, 0], sizes = [2, 8, 64], strides = [1, 1, 1]} : vector<2x8x128xf32> to vector<2x8x64xf32>
    %20 = vector.extract_strided_slice %17 {offsets = [0, 0, 0], sizes = [2, 8, 64], strides = [1, 1, 1]} : vector<2x8x128xf32> to vector<2x8x64xf32>
    "tpu.trace_start"() <{level = 10 : i32, message = "bqd,bkd->bqk"}> : () -> ()
    %cst_11 = arith.constant dense<0.000000e+00> : vector<2x8x8xf32>
    %21 = tpu.matmul %18, %19, %cst_11 {dimension_numbers = #tpu.dot_dimension_numbers<[2], [2], [1], [1], [0, 0, 0, 1, 1, 1], [0], [0]>} : vector<2x8x64xf32>, vector<2x8x64xf32>, vector<2x8x8xf32> -> vector<2x8x8xf32>
    "tpu.trace_stop"() : () -> ()
    %cst_12 = arith.constant dense<0xFF800000> : vector<2x8xf32>
    %22 = vector.multi_reduction <maximumf>, %21, %cst_12 [2] : vector<2x8x8xf32> to vector<2x8xf32>
    %23 = vector.shape_cast %22 : vector<2x8xf32> to vector<2x8x1xf32>
    %24 = vector.broadcast %23 : vector<2x8x1xf32> to vector<2x8x8xf32>
    %25 = arith.subf %21, %24 : vector<2x8x8xf32>
    %26 = math.exp %25 : vector<2x8x8xf32>
    %cst_13 = arith.constant dense<0.000000e+00> : vector<2x8xf32>
    %27 = vector.multi_reduction <add>, %26, %cst_13 [2] : vector<2x8x8xf32> to vector<2x8xf32>
    %28 = vector.shape_cast %27 : vector<2x8xf32> to vector<2x8x1xf32>
    %29 = tpu.reciprocal %28 {approx = true} : vector<2x8x1xf32> -> vector<2x8x1xf32>
    %30 = vector.broadcast %29 : vector<2x8x1xf32> to vector<2x8x8xf32>
    %31 = arith.mulf %26, %30 : vector<2x8x8xf32>
    "tpu.trace_start"() <{level = 10 : i32, message = "bqk,bkd->bqd"}> : () -> ()
    %cst_14 = arith.constant dense<0.000000e+00> : vector<2x8x64xf32>
    %32 = tpu.matmul %31, %20, %cst_14 {dimension_numbers = #tpu.dot_dimension_numbers<[2], [1], [1], [2], [0, 0, 0, 1, 1, 2], [0], [0]>} : vector<2x8x8xf32>, vector<2x8x64xf32>, vector<2x8x64xf32> -> vector<2x8x64xf32>
    "tpu.trace_stop"() : () -> ()
    %33 = vector.shape_cast %32 : vector<2x8x64xf32> to vector<16x64xf32>
    %34 = vector.extract_strided_slice %13 {offsets = [0, 0, 64], sizes = [2, 8, 64], strides = [1, 1, 1]} : vector<2x8x128xf32> to vector<2x8x64xf32>
    %35 = vector.extract_strided_slice %15 {offsets = [0, 0, 64], sizes = [2, 8, 64], strides = [1, 1, 1]} : vector<2x8x128xf32> to vector<2x8x64xf32>
    %36 = vector.extract_strided_slice %17 {offsets = [0, 0, 64], sizes = [2, 8, 64], strides = [1, 1, 1]} : vector<2x8x128xf32> to vector<2x8x64xf32>
    "tpu.trace_start"() <{level = 10 : i32, message = "bqd,bkd->bqk"}> : () -> ()
    %cst_15 = arith.constant dense<0.000000e+00> : vector<2x8x8xf32>
    %37 = tpu.matmul %34, %35, %cst_15 {dimension_numbers = #tpu.dot_dimension_numbers<[2], [2], [1], [1], [0, 0, 0, 1, 1, 1], [0], [0]>} : vector<2x8x64xf32>, vector<2x8x64xf32>, vector<2x8x8xf32> -> vector<2x8x8xf32>
    "tpu.trace_stop"() : () -> ()
    %cst_16 = arith.constant dense<0xFF800000> : vector<2x8xf32>
    %38 = vector.multi_reduction <maximumf>, %37, %cst_16 [2] : vector<2x8x8xf32> to vector<2x8xf32>
    %39 = vector.shape_cast %38 : vector<2x8xf32> to vector<2x8x1xf32>
    %40 = vector.broadcast %39 : vector<2x8x1xf32> to vector<2x8x8xf32>
    %41 = arith.subf %37, %40 : vector<2x8x8xf32>
    %42 = math.exp %41 : vector<2x8x8xf32>
    %cst_17 = arith.constant dense<0.000000e+00> : vector<2x8xf32>
    %43 = vector.multi_reduction <add>, %42, %cst_17 [2] : vector<2x8x8xf32> to vector<2x8xf32>
    %44 = vector.shape_cast %43 : vector<2x8xf32> to vector<2x8x1xf32>
    %45 = tpu.reciprocal %44 {approx = true} : vector<2x8x1xf32> -> vector<2x8x1xf32>
    %46 = vector.broadcast %45 : vector<2x8x1xf32> to vector<2x8x8xf32>
    %47 = arith.mulf %42, %46 : vector<2x8x8xf32>
    "tpu.trace_start"() <{level = 10 : i32, message = "bqk,bkd->bqd"}> : () -> ()
    %cst_18 = arith.constant dense<0.000000e+00> : vector<2x8x64xf32>
    %48 = tpu.matmul %47, %36, %cst_18 {dimension_numbers = #tpu.dot_dimension_numbers<[2], [1], [1], [2], [0, 0, 0, 1, 1, 2], [0], [0]>} : vector<2x8x8xf32>, vector<2x8x64xf32>, vector<2x8x64xf32> -> vector<2x8x64xf32>
    "tpu.trace_stop"() : () -> ()
    %49 = vector.shape_cast %48 : vector<2x8x64xf32> to vector<16x64xf32>
    %50 = tpu.concatenate %33, %49 in 1 : vector<16x64xf32>, vector<16x64xf32> -> vector<16x128xf32>
    %c0_19 = arith.constant 0 : index
    %c0_20 = arith.constant 0 : index
    %51 = vector.load %arg6[%c0_19, %c0_20] : memref<128x128xf32, #tpu.memory_space<vmem>>, vector<128x128xf32>
    %cst_21 = arith.constant dense<0.000000e+00> : vector<16x128xf32>
    %52 = tpu.matmul %50, %51, %cst_21 {dimension_numbers = #tpu.dot_dimension_numbers<[1], [0], [0], [1], [0, 0, 1, 1], [], []>} : vector<16x128xf32>, vector<128x128xf32>, vector<16x128xf32> -> vector<16x128xf32>
    %c0_22 = arith.constant 0 : index
    %c0_23 = arith.constant 0 : index
    %53 = vector.load %arg7[%c0_22, %c0_23] : memref<1x128xf32, #tpu.memory_space<vmem>>, vector<1x128xf32>
    %54 = vector.broadcast %53 : vector<1x128xf32> to vector<16x128xf32>
    %55 = arith.addf %52, %54 : vector<16x128xf32>
    %56 = arith.addf %6, %55 : vector<16x128xf32>
    %c0_24 = arith.constant 0 : index
    %c0_25 = arith.constant 0 : index
    %57 = vector.load %arg8[%c0_24, %c0_25] : memref<1x128xf32, #tpu.memory_space<vmem>>, vector<1x128xf32>
    %c0_26 = arith.constant 0 : index
    %c0_27 = arith.constant 0 : index
    %58 = vector.load %arg9[%c0_26, %c0_27] : memref<1x128xf32, #tpu.memory_space<vmem>>, vector<1x128xf32>
    %cst_28 = arith.constant dense<0.000000e+00> : vector<16xf32>
    %59 = vector.multi_reduction <add>, %56, %cst_28 [1] : vector<16x128xf32> to vector<16xf32>
    %60 = vector.shape_cast %59 : vector<16xf32> to vector<16x1xf32>
    %cst_29 = arith.constant 1.280000e+02 : f32
    %61 = vector.broadcast %cst_29 : f32 to vector<16x1xf32>
    %62 = arith.divf %60, %61 : vector<16x1xf32>
    %63 = vector.broadcast %62 : vector<16x1xf32> to vector<16x128xf32>
    %64 = arith.subf %56, %63 : vector<16x128xf32>
    %65 = arith.mulf %64, %64 : vector<16x128xf32>
    %cst_30 = arith.constant dense<0.000000e+00> : vector<16xf32>
    %66 = vector.multi_reduction <add>, %65, %cst_30 [1] : vector<16x128xf32> to vector<16xf32>
    %67 = vector.shape_cast %66 : vector<16xf32> to vector<16x1xf32>
    %cst_31 = arith.constant 1.280000e+02 : f32
    %68 = vector.broadcast %cst_31 : f32 to vector<16x1xf32>
    %69 = arith.divf %67, %68 : vector<16x1xf32>
    %cst_32 = arith.constant 9.99999974E-6 : f32
    %70 = vector.broadcast %cst_32 : f32 to vector<16x1xf32>
    %71 = arith.addf %69, %70 : vector<16x1xf32>
    %72 = math.rsqrt %71 : vector<16x1xf32>
    %73 = vector.broadcast %72 : vector<16x1xf32> to vector<16x128xf32>
    %74 = arith.mulf %64, %73 : vector<16x128xf32>
    %75 = vector.broadcast %57 : vector<1x128xf32> to vector<16x128xf32>
    %76 = arith.mulf %74, %75 : vector<16x128xf32>
    %77 = vector.broadcast %58 : vector<1x128xf32> to vector<16x128xf32>
    %78 = arith.addf %76, %77 : vector<16x128xf32>
    %c0_33 = arith.constant 0 : index
    %c0_34 = arith.constant 0 : index
    %79 = vector.load %arg10[%c0_33, %c0_34] : memref<128x512xf32, #tpu.memory_space<vmem>>, vector<128x512xf32>
    %cst_35 = arith.constant dense<0.000000e+00> : vector<16x512xf32>
    %80 = tpu.matmul %78, %79, %cst_35 {dimension_numbers = #tpu.dot_dimension_numbers<[1], [0], [0], [1], [0, 0, 1, 1], [], []>} : vector<16x128xf32>, vector<128x512xf32>, vector<16x512xf32> -> vector<16x512xf32>
    %c0_36 = arith.constant 0 : index
    %c0_37 = arith.constant 0 : index
    %81 = vector.load %arg11[%c0_36, %c0_37] : memref<1x512xf32, #tpu.memory_space<vmem>>, vector<1x512xf32>
    %82 = vector.broadcast %81 : vector<1x512xf32> to vector<16x512xf32>
    %83 = arith.addf %80, %82 : vector<16x512xf32>
    %cst_38 = arith.constant 0.000000e+00 : f32
    %84 = vector.broadcast %cst_38 : f32 to vector<16x512xf32>
    %85 = arith.maximumf %83, %84 : vector<16x512xf32>
    %c0_39 = arith.constant 0 : index
    %c0_40 = arith.constant 0 : index
    %86 = vector.load %arg12[%c0_39, %c0_40] : memref<512x128xf32, #tpu.memory_space<vmem>>, vector<512x128xf32>
    %cst_41 = arith.constant dense<0.000000e+00> : vector<16x128xf32>
    %87 = tpu.matmul %85, %86, %cst_41 {dimension_numbers = #tpu.dot_dimension_numbers<[1], [0], [0], [1], [0, 0, 1, 1], [], []>} : vector<16x512xf32>, vector<512x128xf32>, vector<16x128xf32> -> vector<16x128xf32>
    %c0_42 = arith.constant 0 : index
    %c0_43 = arith.constant 0 : index
    %88 = vector.load %arg13[%c0_42, %c0_43] : memref<1x128xf32, #tpu.memory_space<vmem>>, vector<1x128xf32>
    %89 = vector.broadcast %88 : vector<1x128xf32> to vector<16x128xf32>
    %90 = arith.addf %87, %89 : vector<16x128xf32>
    %91 = arith.addf %78, %90 : vector<16x128xf32>
    %c0_44 = arith.constant 0 : index
    %c0_45 = arith.constant 0 : index
    %92 = vector.load %arg14[%c0_44, %c0_45] : memref<1x128xf32, #tpu.memory_space<vmem>>, vector<1x128xf32>
    %c0_46 = arith.constant 0 : index
    %c0_47 = arith.constant 0 : index
    %93 = vector.load %arg15[%c0_46, %c0_47] : memref<1x128xf32, #tpu.memory_space<vmem>>, vector<1x128xf32>
    %cst_48 = arith.constant dense<0.000000e+00> : vector<16xf32>
    %94 = vector.multi_reduction <add>, %91, %cst_48 [1] : vector<16x128xf32> to vector<16xf32>
    %95 = vector.shape_cast %94 : vector<16xf32> to vector<16x1xf32>
    %cst_49 = arith.constant 1.280000e+02 : f32
    %96 = vector.broadcast %cst_49 : f32 to vector<16x1xf32>
    %97 = arith.divf %95, %96 : vector<16x1xf32>
    %98 = vector.broadcast %97 : vector<16x1xf32> to vector<16x128xf32>
    %99 = arith.subf %91, %98 : vector<16x128xf32>
    %100 = arith.mulf %99, %99 : vector<16x128xf32>
    %cst_50 = arith.constant dense<0.000000e+00> : vector<16xf32>
    %101 = vector.multi_reduction <add>, %100, %cst_50 [1] : vector<16x128xf32> to vector<16xf32>
    %102 = vector.shape_cast %101 : vector<16xf32> to vector<16x1xf32>
    %cst_51 = arith.constant 1.280000e+02 : f32
    %103 = vector.broadcast %cst_51 : f32 to vector<16x1xf32>
    %104 = arith.divf %102, %103 : vector<16x1xf32>
    %cst_52 = arith.constant 9.99999974E-6 : f32
    %105 = vector.broadcast %cst_52 : f32 to vector<16x1xf32>
    %106 = arith.addf %104, %105 : vector<16x1xf32>
    %107 = math.rsqrt %106 : vector<16x1xf32>
    %108 = vector.broadcast %107 : vector<16x1xf32> to vector<16x128xf32>
    %109 = arith.mulf %99, %108 : vector<16x128xf32>
    %110 = vector.broadcast %92 : vector<1x128xf32> to vector<16x128xf32>
    %111 = arith.mulf %109, %110 : vector<16x128xf32>
    %112 = vector.broadcast %93 : vector<1x128xf32> to vector<16x128xf32>
    %113 = arith.addf %111, %112 : vector<16x128xf32>
    %c0_53 = arith.constant 0 : index
    %c0_54 = arith.constant 0 : index
    %114 = vector.load %arg16[%c0_53, %c0_54] : memref<1x128xf32, #tpu.memory_space<vmem>>, vector<1x128xf32>
    %c0_55 = arith.constant 0 : index
    %c0_56 = arith.constant 0 : index
    %115 = vector.load %arg17[%c0_55, %c0_56] : memref<1x128xf32, #tpu.memory_space<vmem>>, vector<1x128xf32>
    %cst_57 = arith.constant dense<0.000000e+00> : vector<16xf32>
    %116 = vector.multi_reduction <add>, %113, %cst_57 [1] : vector<16x128xf32> to vector<16xf32>
    %117 = vector.shape_cast %116 : vector<16xf32> to vector<16x1xf32>
    %cst_58 = arith.constant 1.280000e+02 : f32
    %118 = vector.broadcast %cst_58 : f32 to vector<16x1xf32>
    %119 = arith.divf %117, %118 : vector<16x1xf32>
    %120 = vector.broadcast %119 : vector<16x1xf32> to vector<16x128xf32>
    %121 = arith.subf %113, %120 : vector<16x128xf32>
    %122 = arith.mulf %121, %121 : vector<16x128xf32>
    %cst_59 = arith.constant dense<0.000000e+00> : vector<16xf32>
    %123 = vector.multi_reduction <add>, %122, %cst_59 [1] : vector<16x128xf32> to vector<16xf32>
    %124 = vector.shape_cast %123 : vector<16xf32> to vector<16x1xf32>
    %cst_60 = arith.constant 1.280000e+02 : f32
    %125 = vector.broadcast %cst_60 : f32 to vector<16x1xf32>
    %126 = arith.divf %124, %125 : vector<16x1xf32>
    %cst_61 = arith.constant 9.99999974E-6 : f32
    %127 = vector.broadcast %cst_61 : f32 to vector<16x1xf32>
    %128 = arith.addf %126, %127 : vector<16x1xf32>
    %129 = math.rsqrt %128 : vector<16x1xf32>
    %130 = vector.broadcast %129 : vector<16x1xf32> to vector<16x128xf32>
    %131 = arith.mulf %121, %130 : vector<16x128xf32>
    %132 = vector.broadcast %114 : vector<1x128xf32> to vector<16x128xf32>
    %133 = arith.mulf %131, %132 : vector<16x128xf32>
    %134 = vector.broadcast %115 : vector<1x128xf32> to vector<16x128xf32>
    %135 = arith.addf %133, %134 : vector<16x128xf32>
    %136 = vector.shape_cast %135 : vector<16x128xf32> to vector<2x8x128xf32>
    %c0_62 = arith.constant 0 : index
    %c0_63 = arith.constant 0 : index
    %c0_64 = arith.constant 0 : index
    %137 = vector.load %arg18[%c0_62, %c0_63, %c0_64] : memref<2x8x128xf32, #tpu.memory_space<vmem>>, vector<2x8x128xf32>
    tpu.vector_store %arg18[%c0_62, %c0_63, %c0_64], %136 {strides = array<i32>} : memref<2x8x128xf32, #tpu.memory_space<vmem>>, vector<2x8x128xf32>,
    return
  }
  func.func @transform_0(%arg0: i32) -> (i32, i32, i32) {
    %c0_i32 = arith.constant 0 : i32
    %c0_i32_0 = arith.constant 0 : i32
    %c0_i32_1 = arith.constant 0 : i32
    return %arg0, %c0_i32, %c0_i32_0 : i32, i32, i32
  }
  func.func @transform_1(%arg0: i32) -> (i32, i32) {
    %c0_i32 = arith.constant 0 : i32
    %c0_i32_0 = arith.constant 0 : i32
    %c0_i32_1 = arith.constant 0 : i32
    return %c0_i32, %c0_i32_0 : i32, i32
  }
  func.func @transform_2(%arg0: i32) -> (i32, i32) {
    %c0_i32 = arith.constant 0 : i32
    %c0_i32_0 = arith.constant 0 : i32
    %c0_i32_1 = arith.constant 0 : i32
    return %c0_i32, %c0_i32_0 : i32, i32
  }
  func.func @transform_3(%arg0: i32) -> (i32, i32) {
    %c0_i32 = arith.constant 0 : i32
    %c0_i32_0 = arith.constant 0 : i32
    %c0_i32_1 = arith.constant 0 : i32
    return %c0_i32, %c0_i32_0 : i32, i32
  }
  func.func @transform_4(%arg0: i32) -> (i32, i32) {
    %c0_i32 = arith.constant 0 : i32
    %c0_i32_0 = arith.constant 0 : i32
    %c0_i32_1 = arith.constant 0 : i32
    return %c0_i32, %c0_i32_0 : i32, i32
  }
  func.func @transform_5(%arg0: i32) -> (i32, i32) {
    %c0_i32 = arith.constant 0 : i32
    %c0_i32_0 = arith.constant 0 : i32
    %c0_i32_1 = arith.constant 0 : i32
    return %c0_i32, %c0_i32_0 : i32, i32
  }
  func.func @transform_6(%arg0: i32) -> (i32, i32) {
    %c0_i32 = arith.constant 0 : i32
    %c0_i32_0 = arith.constant 0 : i32
    %c0_i32_1 = arith.constant 0 : i32
    return %c0_i32, %c0_i32_0 : i32, i32
  }
  func.func @transform_7(%arg0: i32) -> (i32, i32) {
    %c0_i32 = arith.constant 0 : i32
    %c0_i32_0 = arith.constant 0 : i32
    %c0_i32_1 = arith.constant 0 : i32
    return %c0_i32, %c0_i32_0 : i32, i32
  }
  func.func @transform_8(%arg0: i32) -> (i32, i32) {
    %c0_i32 = arith.constant 0 : i32
    %c0_i32_0 = arith.constant 0 : i32
    %c0_i32_1 = arith.constant 0 : i32
    return %c0_i32, %c0_i32_0 : i32, i32
  }
  func.func @transform_9(%arg0: i32) -> (i32, i32) {
    %c0_i32 = arith.constant 0 : i32
    %c0_i32_0 = arith.constant 0 : i32
    %c0_i32_1 = arith.constant 0 : i32
    return %c0_i32, %c0_i32_0 : i32, i32
  }
  func.func @transform_10(%arg0: i32) -> (i32, i32) {
    %c0_i32 = arith.constant 0 : i32
    %c0_i32_0 = arith.constant 0 : i32
    %c0_i32_1 = arith.constant 0 : i32
    return %c0_i32, %c0_i32_0 : i32, i32
  }
  func.func @transform_11(%arg0: i32) -> (i32, i32) {
    %c0_i32 = arith.constant 0 : i32
    %c0_i32_0 = arith.constant 0 : i32
    %c0_i32_1 = arith.constant 0 : i32
    return %c0_i32, %c0_i32_0 : i32, i32
  }
  func.func @transform_12(%arg0: i32) -> (i32, i32) {
    %c0_i32 = arith.constant 0 : i32
    %c0_i32_0 = arith.constant 0 : i32
    %c0_i32_1 = arith.constant 0 : i32
    return %c0_i32, %c0_i32_0 : i32, i32
  }
  func.func @transform_13(%arg0: i32) -> (i32, i32) {
    %c0_i32 = arith.constant 0 : i32
    %c0_i32_0 = arith.constant 0 : i32
    %c0_i32_1 = arith.constant 0 : i32
    return %c0_i32, %c0_i32_0 : i32, i32
  }
  func.func @transform_14(%arg0: i32) -> (i32, i32) {
    %c0_i32 = arith.constant 0 : i32
    %c0_i32_0 = arith.constant 0 : i32
    %c0_i32_1 = arith.constant 0 : i32
    return %c0_i32, %c0_i32_0 : i32, i32
  }
  func.func @transform_15(%arg0: i32) -> (i32, i32) {
    %c0_i32 = arith.constant 0 : i32
    %c0_i32_0 = arith.constant 0 : i32
    %c0_i32_1 = arith.constant 0 : i32
    return %c0_i32, %c0_i32_0 : i32, i32
  }
  func.func @transform_16(%arg0: i32) -> (i32, i32) {
    %c0_i32 = arith.constant 0 : i32
    %c0_i32_0 = arith.constant 0 : i32
    %c0_i32_1 = arith.constant 0 : i32
    return %c0_i32, %c0_i32_0 : i32, i32
  }
  func.func @transform_17(%arg0: i32) -> (i32, i32, i32) {
    %c0_i32 = arith.constant 0 : i32
    %c0_i32_0 = arith.constant 0 : i32
    %c0_i32_1 = arith.constant 0 : i32
    return %arg0, %c0_i32, %c0_i32_0 : i32, i32, i32
  }
}

</mosaic_0001>

<bundles_post_ra>
// kernel: tpu_custom_call.1
= control target key start
LH: loop header
LB: loop body
LE: loop exit
PB: predicated region body
PF: predicated region fallthrough
CT: control target
= control target key end

     0   :  { %s2964_s0 = inlined_call_operand.hbm [shape: f32[2,8,32], index: 0, kind: input, shape index: {}]   ;;  %s2965_s1 = inlined_call_operand.hbm [shape: f32[32,128], index: 1, kind: input, shape index: {}]   ;;  %s2966_s2 = inlined_call_operand.hbm [shape: f32[1,128], index: 2, kind: input, shape index: {}]   ;;  %s2967_s3 = inlined_call_operand.hbm [shape: f32[128,384], index: 3, kind: input, shape index: {}]   ;;  %s2968_s4 = inlined_call_operand.vmem [shape: f32[1,384], index: 4, kind: input, shape index: {}]   ;;  %s2969_s5 = inlined_call_operand.hbm [shape: f32[128,128], index: 5, kind: input, shape index: {}]   ;;  %s2970_s6 = inlined_call_operand.vmem [shape: f32[1,128], index: 6, kind: input, shape index: {}]   ;;  %s2971_s7 = inlined_call_operand.vmem [shape: f32[1,128], index: 7, kind: input, shape index: {}]   ;;  %s2972_s8 = inlined_call_operand.vmem [shape: f32[1,128], index: 8, kind: input, shape index: {}]   ;;  %s2973_s9 = inlined_call_operand.hbm [shape: f32[128,512], index: 9, kind: input, shape index: {}]   ;;  %s2974_s10 = inlined_call_operand.vmem [shape: f32[1,512], index: 10, kind: input, shape index: {}]   ;;  %s2975_s11 = inlined_call_operand.hbm [shape: f32[512,128], index: 11, kind: input, shape index: {}]   ;;  %s2976_s12 = inlined_call_operand.vmem [shape: f32[1,128], index: 12, kind: input, shape index: {}]   ;;  %s2977_s13 = inlined_call_operand.vmem [shape: f32[1,128], index: 13, kind: input, shape index: {}]   ;;  %s2978_s14 = inlined_call_operand.vmem [shape: f32[1,128], index: 14, kind: input, shape index: {}]   ;;  %s2979_s15 = inlined_call_operand.vmem [shape: f32[1,128], index: 15, kind: input, shape index: {}]   ;;  %s2980_s16 = inlined_call_operand.vmem [shape: f32[1,128], index: 16, kind: input, shape index: {}]   ;;  %s2981_s17 = inlined_call_operand.hbm [shape: f32[2,8,128], index: 17, kind: output, shape index: {}]  }
   0x1   :  { %2989 = sst [smem:[#allocation20_spill]] %s2964_s0 }
   0x2   :  { %2990 = sst [smem:[#allocation21_spill]] %s2965_s1 }
   0x3   :  { %2991 = sst [smem:[#allocation22_spill]] %s2981_s17 }
   0x4   :  { %22 = vsyncpa [#allocation3], 0 }
   0x5   :  { %23 = vsyncpa [#allocation6], 0 }
   0x6   :  { %24 = vsyncpa [#allocation9], 0 }
   0x7   :  { %25 = vsyncpa [#allocation12], 0 }
   0x8   :  { %26 = vsyncpa [#allocation4], 0  ;;  %s2586_s24 = smov [#allocation5]   ;;  %s2587_s26 = smov [#allocation8]  }
   0x9   :  { %s44_s25 = sshll.u32 %s2586_s24, 4  ;;  %s66_s27 = sshll.u32 %s2587_s26, 4  ;;  %s45_s25 = int_to_ptr.vmem [resolvable:$true] %s44_s25  ;;  %s2693_s27 = int_to_ptr.vmem [resolvable:$true] %s66_s27 }
   0xa   :  { %s2992_s0 = sld [smem:[#allocation21_spill]] }
  0x10   :  { %s2400_s30 = scalar_lea.hbm %s2992_s0, 512 }
  0x11   :  { %p2401_p0 = scmp.ne.s32.totalorder %s2992_s0, %s2400_s30  ;;  %p2404_p1 = scmp.lt.u32.totalorder %s2400_s30, %s2992_s0 }
  0x13   :  { %p2406_p2 = pnand %p2404_p1, %p2401_p0 }
  0x15   :  { %2409 = shalt.err (!%p2406_p2)
}
  0x16   :  { %s2410_s21 = scalar_lea.vmem %s45_s25, 512  ;;  %p2415_p4 = scmp.lt.s32.totalorder %s45_s25, %s45_s25 }
  0x17   :  { %p2411_p3 = scmp.ne.s32.totalorder %s45_s25, %s2410_s21  ;;  %p2416_p5 = scmp.lt.s32.totalorder %s2410_s21, %s2410_s21 }
  0x19   :  { %p2417_p6 = por %p2416_p5, %p2415_p4 }
  0x1b   :  { %p2418_p7 = pnand %p2417_p6, %p2411_p3 }
  0x1d   :  { %2421 = shalt.err (!%p2418_p7)
}
  0x1e   :  { %s2984_s22 = smov 128   ;;  %s2986_s23 = smov 8  }
  0x1f   :  { %50 = dma.hbm_to_vmem [thread:$0]  %s2992_s0, 512, %s45_s25, [#allocation6], %s2984_s22, %s2984_s22, %s2986_s23  }
  0x20   :  { %s2422_s30 = scalar_lea.hbm %s2967_s3, 6144 }
  0x21   :  { %p2423_p8 = scmp.ne.s32.totalorder %s2967_s3, %s2422_s30  ;;  %p2426_p9 = scmp.lt.u32.totalorder %s2422_s30, %s2967_s3 }
  0x23   :  { %p2428_p10 = pnand %p2426_p9, %p2423_p8 }
  0x25   :  { %2431 = shalt.err (!%p2428_p10)
}
  0x26   :  { %s2432_s21 = scalar_lea.vmem %s2693_s27, 6144  ;;  %p2437_p12 = scmp.lt.s32.totalorder %s2693_s27, %s2693_s27 }
  0x27   :  { %p2433_p11 = scmp.ne.s32.totalorder %s2693_s27, %s2432_s21  ;;  %p2438_p13 = scmp.lt.s32.totalorder %s2432_s21, %s2432_s21 }
  0x29   :  { %p2439_p0 = por %p2438_p13, %p2437_p12 }
  0x2b   :  { %p2440_p1 = pnand %p2439_p0, %p2433_p11 }
  0x2d   :  { %2443 = shalt.err (!%p2440_p1)
}
  0x2e   :  { %s2590_s25 = smov 384   ;;  %s2591_s0 = smov 24  }
  0x2f   :  { %72 = dma.hbm_to_vmem [thread:$0]  %s2967_s3, 6144, %s2693_s27, [#allocation9], %s2590_s25, %s2590_s25, %s2591_s0  }
  0x30   :  { %s2592_s28 = smov [#allocation11]   ;;  %s2444_s19 = scalar_lea.hbm %s2973_s9, 8192 }
  0x31   :  { %s98_s29 = sshll.u32 %s2592_s28, 4  ;;  %p2445_p2 = scmp.ne.s32.totalorder %s2973_s9, %s2444_s19  ;;  %s99_s29 = int_to_ptr.vmem [resolvable:$true] %s98_s29 }
  0x32   :  { %p2448_p3 = scmp.lt.u32.totalorder %s2444_s19, %s2973_s9 }
  0x34   :  { %p2450_p4 = pnand %p2448_p3, %p2445_p2 }
  0x36   :  { %2453 = shalt.err (!%p2450_p4)
}
  0x37   :  { %s2454_s23 = scalar_lea.vmem %s99_s29, 8192  ;;  %p2459_p6 = scmp.lt.s32.totalorder %s99_s29, %s99_s29 }
  0x38   :  { %p2455_p5 = scmp.ne.s32.totalorder %s99_s29, %s2454_s23  ;;  %p2460_p7 = scmp.lt.s32.totalorder %s2454_s23, %s2454_s23 }
  0x3a   :  { %p2461_p8 = por %p2460_p7, %p2459_p6 }
  0x3c   :  { %p2462_p9 = pnand %p2461_p8, %p2455_p5 }
  0x3e   :  { %2465 = shalt.err (!%p2462_p9)
}
  0x3f   :  { %s2593_s3 = smov 512   ;;  %s2594_s27 = smov 32  }
  0x40   :  { %104 = dma.hbm_to_vmem [thread:$0]  %s2973_s9, 8192, %s99_s29, [#allocation12], %s2593_s3, %s2593_s3, %s2594_s27  }
  0x41   :  { %s2595_s24 = smov [#allocation2]   ;;  %s2596_s22 = smov [#allocation7]  }
  0x42   :  { %s32_s26 = sshll.u32 %s2595_s24, 4  ;;  %s57_s28 = sshll.u32 %s2596_s22, 4  ;;  %s33_s26 = int_to_ptr.vmem [resolvable:$true] %s32_s26  ;;  %s58_s28 = int_to_ptr.vmem [resolvable:$true] %s57_s28 }
  0x43   :  { %s2993_s19 = sld [smem:[#allocation20_spill]] }
  0x49   :  { %s2466_s1 = scalar_lea.hbm %s2993_s19, 256 }
  0x4a   :  { %p2467_p10 = scmp.ne.s32.totalorder %s2993_s19, %s2466_s1  ;;  %p2470_p11 = scmp.lt.u32.totalorder %s2466_s1, %s2993_s19 }
  0x4c   :  { %p2472_p12 = pnand %p2470_p11, %p2467_p10 }
  0x4e   :  { %2475 = shalt.err (!%p2472_p12)
}
  0x4f   :  { %s2476_s9 = scalar_lea.vmem %s33_s26, 256  ;;  %p2481_p0 = scmp.lt.s32.totalorder %s33_s26, %s33_s26 }
  0x50   :  { %p2477_p13 = scmp.ne.s32.totalorder %s33_s26, %s2476_s9  ;;  %p2482_p1 = scmp.lt.s32.totalorder %s2476_s9, %s2476_s9 }
  0x52   :  { %p2483_p2 = por %p2482_p1, %p2481_p0 }
  0x54   :  { %p2484_p3 = pnand %p2483_p2, %p2477_p13 }
  0x56   :  { %2487 = shalt.err (!%p2484_p3)
}
  0x57   :  { %s2994_s29 = smov 8   ;;  %s2995_s3 = smov 128  }
  0x58   :  { %38 = dma.hbm_to_vmem [thread:$0]  %s2993_s19, 256, %s33_s26, [#allocation3], %s2995_s3, %s2995_s3, %s2994_s29  }
  0x59   :  { %s2488_s24 = scalar_lea.hbm %s2966_s2, 16 }
  0x5a   :  { %p2489_p4 = scmp.ne.s32.totalorder %s2966_s2, %s2488_s24  ;;  %p2492_p5 = scmp.lt.u32.totalorder %s2488_s24, %s2966_s2 }
  0x5c   :  { %p2494_p6 = pnand %p2492_p5, %p2489_p4 }
  0x5e   :  { %2497 = shalt.err (!%p2494_p6)
}
  0x5f   :  { %s2498_s20 = scalar_lea.vmem %s58_s28, 16  ;;  %s2502_s23 = scalar_lea.vmem %s58_s28, 32 }
  0x60   :  { %p2499_p7 = scmp.ne.s32.totalorder %s58_s28, %s2498_s20  ;;  %p2503_p8 = scmp.lt.s32.totalorder %s58_s28, %s58_s28 }
  0x61   :  { %p2504_p9 = scmp.lt.s32.totalorder %s2502_s23, %s2498_s20 }
  0x63   :  { %p2505_p10 = por %p2504_p9, %p2503_p8 }
  0x65   :  { %p2506_p11 = pnand %p2505_p10, %p2499_p7 }
  0x67   :  { %2509 = shalt.err (!%p2506_p11)
}
  0x68   :  { %60 = dma.hbm_to_vmem [thread:$0]  %s2966_s2, 16, %s58_s28, [#allocation6]  }
  0x69   :  { %s2597_s21 = smov [#allocation10]   ;;  %s2598_s27 = smov [#allocation13]  }
  0x6a   :  { %s80_s9 = sshll.u32 %s2597_s21, 4  ;;  %s112_s25 = sshll.u32 %s2598_s27, 4  ;;  %s81_s9 = int_to_ptr.vmem [resolvable:$true] %s80_s9  ;;  %s113_s25 = int_to_ptr.vmem [resolvable:$true] %s112_s25 }
  0x6b   :  { %s2510_s24 = scalar_lea.hbm %s2969_s5, 2048 }
  0x6c   :  { %p2511_p12 = scmp.ne.s32.totalorder %s2969_s5, %s2510_s24  ;;  %p2514_p13 = scmp.lt.u32.totalorder %s2510_s24, %s2969_s5 }
  0x6e   :  { %p2516_p0 = pnand %p2514_p13, %p2511_p12 }
  0x70   :  { %2519 = shalt.err (!%p2516_p0)
}
  0x71   :  { %s2520_s2 = scalar_lea.vmem %s81_s9, 2048  ;;  %p2525_p2 = scmp.lt.s32.totalorder %s81_s9, %s81_s9 }
  0x72   :  { %p2521_p1 = scmp.ne.s32.totalorder %s81_s9, %s2520_s2  ;;  %p2526_p3 = scmp.lt.s32.totalorder %s2520_s2, %s2520_s2 }
  0x74   :  { %p2527_p4 = por %p2526_p3, %p2525_p2 }
  0x76   :  { %p2528_p5 = pnand %p2527_p4, %p2521_p1 }
  0x78   :  { %2531 = shalt.err (!%p2528_p5)
}
  0x79   :  { %86 = dma.hbm_to_vmem [thread:$0]  %s2969_s5, 2048, %s81_s9, [#allocation9], %s2995_s3, %s2995_s3, %s2994_s29  }
  0x7a   :  { %s2532_s19 = scalar_lea.hbm %s2975_s11, 8192 }
  0x7b   :  { %p2533_p6 = scmp.ne.s32.totalorder %s2975_s11, %s2532_s19  ;;  %p2536_p7 = scmp.lt.u32.totalorder %s2532_s19, %s2975_s11 }
  0x7d   :  { %p2538_p8 = pnand %p2536_p7, %p2533_p6 }
  0x7f   :  { %2541 = shalt.err (!%p2538_p8)
}
  0x80   :  { %s2542_s24 = scalar_lea.vmem %s113_s25, 8192  ;;  %p2547_p10 = scmp.lt.s32.totalorder %s113_s25, %s113_s25 }
  0x81   :  { %p2543_p9 = scmp.ne.s32.totalorder %s113_s25, %s2542_s24  ;;  %p2548_p11 = scmp.lt.s32.totalorder %s2542_s24, %s2542_s24 }
  0x83   :  { %p2549_p12 = por %p2548_p11, %p2547_p10 }
  0x85   :  { %p2550_p13 = pnand %p2549_p12, %p2543_p9 }
  0x87   :  { %2553 = shalt.err (!%p2550_p13)
}
  0x88   :  { %118 = dma.hbm_to_vmem [thread:$0]  %s2975_s11, 8192, %s113_s25, [#allocation12], %s2995_s3, %s2995_s3, %s2994_s29  }
  0x89   :  { %2576 = dma.done.wait [#allocation3], 256  }
  0x8a   :  { %2577 = vsyncadd [#allocation3], 4294967040 }
  0x8b   :  { %2578 = dma.done.wait [#allocation6], 528  }
  0x8c   :  { %2579 = vsyncadd [#allocation6], 4294966768 }
  0x8d   :  { %2580 = dma.done.wait [#allocation9], 8192  }
  0x8e   :  { %2581 = vsyncadd [#allocation9], 4294959104 }
  0x8f   :  { %2582 = dma.done.wait [#allocation12], 16384  }
  0x90   :  { %2583 = vsyncadd [#allocation12], 4294950912  ;;  %vm163_vm0 = vcmask 261120   ;;  %v152_v0 = vld [vmem:[#allocation5] sm:$0xff]  ;;  %v153_v1 = vld [vmem:[#allocation5 + $0x8] sm:$0xff]  ;;  %vm2600_vm1 = vmmov 0  }
  0x91   :  { %v154_v2 = vld [vmem:[#allocation5 + $0x10] sm:$0xff]  ;;  %v2118_v3 = vpack.c.bf16 %v153_v1, %v152_v0  ;;  %v155_v4 = vld [vmem:[#allocation5 + $0x18] sm:$0xff]  ;;  %v249_v8 = vld [vmem:[#allocation8 + $0x20] sm:$0xff]  ;;  %vm462_vm2 = vcmask 523264   ;;  %vm615_vm3 = vcmask 64512   ;;  %s2602_s27 = smov [#allocation14]  }
  0x92   :  { %v150_v5 = vld [vmem:[#allocation2] sm:$0xff]  ;;  %v2122_v6 = vpack.c.bf16 %v155_v4, %v154_v2  ;;  %v245_v9 = vld [vmem:[#allocation8] sm:$0xff]  ;;  %v248_v11 = vld [vmem:[#allocation8 + $0x18] sm:$0xff]  ;;  %s1825_s0 = sshll.u32 %s2602_s27, 4  ;;  %s1826_s0 = int_to_ptr.vmem [resolvable:$true] %s1825_s0 }
  0x93   :  { %2005 = vmatprep.mubr.msk.f32.mxu0 %vm163_vm0, %v150_v5  ;;  %v246_v7 = vld [vmem:[#allocation8 + $0x8] sm:$0xff]  ;;  %2119 = vmatprep.subr.bf16.mxu0 %v2118_v3  ;;  %v247_v12 = vld [vmem:[#allocation8 + $0x10] sm:$0xff]  ;;  %v2128_v14 = vpack.c.bf16 %v248_v11, %v245_v9  ;;  %v252_v15 = vld [vmem:[#allocation8 + $0x38] sm:$0xff]  ;;  %s2554_s17 = scalar_lea.vmem %s1826_s0, 256  ;;  %p2559_p1 = scmp.lt.s32.totalorder %s1826_s0, %s1826_s0 }
  0x94   :  { %v2126_v10 = vpack.c.bf16 %v249_v8, %v246_v7  ;;  %v250_v13 = vld [vmem:[#allocation8 + $0x28] sm:$0xff]  ;;  %2121 = vmatpush3.bf16.msra.mxu0 %v2118_v3  ;;  %v255_v16 = vld [vmem:[#allocation8 + $0x50] sm:$0xff]  ;;  %v253_v21 = vld [vmem:[#allocation8 + $0x40] sm:$0xff]  ;;  %p2555_p0 = scmp.ne.s32.totalorder %s1826_s0, %s2554_s17  ;;  %p2560_p2 = scmp.lt.s32.totalorder %s2554_s17, %s2554_s17 }
  0x95   :  { %v251_v17 = vld [vmem:[#allocation8 + $0x30] sm:$0xff]  ;;  %2123 = vmatprep.subr.bf16.mxu0 %v2122_v6  ;;  %v2158_v18 = vpack.c.bf16 %v250_v13, %v247_v12  ;;  %v2130_v19 = vpack.c.bf16 %v255_v16, %v252_v15  ;;  %v254_v20 = vld [vmem:[#allocation8 + $0x48] sm:$0xff]  ;;  %v256_v23 = vld [vmem:[#allocation8 + $0x58] sm:$0xff]  ;;  %v2599_v16 = vmov 0.0  }
  0x96   :  { %2127 = vmatprep.subr.bf16.mxu1 %v2126_v10  ;;  %v2132_v22 = vpack.c.bf16 %v254_v20, %v251_v17  ;;  %v258_v24 = vld [vmem:[#allocation8 + $0x68] sm:$0xff]  ;;  %v261_v25 = vld [vmem:[#allocation8 + $0x80] sm:$0xff]  ;;  %v260_v28 = vld [vmem:[#allocation8 + $0x78] sm:$0xff]  ;;  %v2162_v32 = vpack.c.bf16 %v256_v23, %v253_v21  ;;  %374 = vmatprep.mubr.f32.mxu1 %v2599_v16  ;;  %p2561_p3 = por %p2560_p2, %p2559_p1 }
  0x97   :  { %2129 = vmatpush1.bf16.msra.mxu1 %v2128_v14  ;;  %v2134_v26 = vpack.c.bf16 %v261_v25, %v258_v24  ;;  %v257_v27 = vld [vmem:[#allocation8 + $0x60] sm:$0xff]  ;;  %v151_v29 = vld [vmem:[#allocation2 + $0x8] sm:$0xff]  ;;  %v262_v35 = vld [vmem:[#allocation8 + $0x88] sm:$0xff] }
  0x98   :  { %2131 = vmatprep.subr.bf16.mxu1 %v2130_v19  ;;  %2125 = vmatpush3.bf16.msra.mxu0 %v2122_v6  ;;  %v264_v30 = vld [vmem:[#allocation8 + $0x98] sm:$0xff]  ;;  %v267_v31 = vld [vmem:[#allocation8 + $0xb0] sm:$0xff]  ;;  %v2136_v33 = vpack.c.bf16 %v260_v28, %v257_v27  ;;  %v266_v38 = vld [vmem:[#allocation8 + $0xa8] sm:$0xff]  ;;  %p2562_p4 = pnand %p2561_p3, %p2555_p0 }
  0x99   :  { %2159 = vmatprep.subr.bf16.mxu0 %v2158_v18  ;;  %v259_v34 = vld [vmem:[#allocation8 + $0x70] sm:$0xff]  ;;  %v2138_v36 = vpack.c.bf16 %v267_v31, %v264_v30  ;;  %v270_v39 = vld [vmem:[#allocation8 + $0xc8] sm:$0xff]  ;;  %v273_v40 = vld [vmem:[#allocation8 + $0xe0] sm:$0xff] }
  0x9a   :  { %v263_v37 = vld [vmem:[#allocation8 + $0x90] sm:$0xff]  ;;  %v2166_v41 = vpack.c.bf16 %v262_v35, %v259_v34  ;;  %v265_v43 = vld [vmem:[#allocation8 + $0xa0] sm:$0xff]  ;;  %v268_v44 = vld [vmem:[#allocation8 + $0xb8] sm:$0xff]  ;;  %v2142_v45 = vpack.c.bf16 %v273_v40, %v270_v39 }
  0x9b   :  { %2133 = vmatpush1.bf16.msra.mxu1 %v2132_v22  ;;  %2006 = vmatmul.mubr.msk.f32.vlgmr.msra.gmra.mrb[0].mxu0 %vm163_vm0, %v151_v29  ;;  %v2140_v42 = vpack.c.bf16 %v266_v38, %v263_v37  ;;  %v269_v46 = vld [vmem:[#allocation8 + $0xc0] sm:$0xff]  ;;  %v272_v47 = vld [vmem:[#allocation8 + $0xd8] sm:$0xff]  ;;  %v279_v49 = vld [vmem:[#allocation8 + $0x110] sm:$0xff]  ;;  %v2170_v50 = vpack.c.bf16 %v268_v44, %v265_v43  ;;  %v295_v22 = vlaneseq }
  0x9c   :  { %2135 = vmatprep.subr.bf16.mxu1 %v2134_v26  ;;  %2161 = vmatpush3.bf16.msra.mxu0 %v2158_v18  ;;  %v276_v48 = vld [vmem:[#allocation8 + $0xf8] sm:$0xff]  ;;  %v2144_v51 = vpack.c.bf16 %v272_v47, %v269_v46  ;;  %v271_v52 = vld [vmem:[#allocation8 + $0xd0] sm:$0xff]  ;;  %v274_v53 = vld [vmem:[#allocation8 + $0xe8] sm:$0xff] }
  0x9d   :  { %2163 = vmatprep.subr.bf16.mxu0 %v2162_v32  ;;  %v2146_v54 = vpack.c.bf16 %v279_v49, %v276_v48  ;;  %v275_v55 = vld [vmem:[#allocation8 + $0xf0] sm:$0xff]  ;;  %v278_v56 = vld [vmem:[#allocation8 + $0x108] sm:$0xff]  ;;  %v285_v58 = vld [vmem:[#allocation8 + $0x140] sm:$0xff]  ;;  %v2174_v59 = vpack.c.bf16 %v274_v53, %v271_v52  ;;  %v2814_v23 = vshrl.u32 %v295_v22, 7 }
  0x9e   :  { %v282_v57 = vld [vmem:[#allocation8 + $0x128] sm:$0xff]  ;;  %v2148_v60 = vpack.c.bf16 %v278_v56, %v275_v55  ;;  %v277_v61 = vld [vmem:[#allocation8 + $0x100] sm:$0xff]  ;;  %v280_v62 = vld [vmem:[#allocation8 + $0x118] sm:$0xff] }
  0x9f   :  { %2137 = vmatpush1.bf16.msra.mxu1 %v2136_v33  ;;  %v2150_v63 = vpack.c.bf16 %v285_v58, %v282_v57  ;;  %v281_v0 = vld [vmem:[#allocation8 + $0x120] sm:$0xff]  ;;  %v284_v1 = vld [vmem:[#allocation8 + $0x138] sm:$0xff]  ;;  %v2178_v2 = vpack.c.bf16 %v280_v62, %v277_v61  ;;  %v283_v4 = vld [vmem:[#allocation8 + $0x130] sm:$0xff]  ;;  %v297_v24 = vsub.s32 0, %v2814_v23  ;;  %v301_v26 = vsub.s32 1, %v2814_v23 }
  0xa0   :  { %2139 = vmatprep.subr.bf16.mxu1 %v2138_v36  ;;  %2165 = vmatpush3.bf16.msra.mxu0 %v2162_v32  ;;  %v2152_v3 = vpack.c.bf16 %v284_v1, %v281_v0  ;;  %v286_v5 = vld [vmem:[#allocation8 + $0x148] sm:$0xff]  ;;  %v288_v7 = vld [vmem:[#allocation8 + $0x158] sm:$0xff]  ;;  %v291_v8 = vld [vmem:[#allocation8 + $0x170] sm:$0xff]  ;;  %v305_v27 = vsub.s32 2, %v2814_v23 }
  0xa1   :  { %2167 = vmatprep.subr.bf16.mxu0 %v2166_v41  ;;  %v2182_v6 = vpack.c.bf16 %v286_v5, %v283_v4  ;;  %v2154_v9 = vpack.c.bf16 %v291_v8, %v288_v7  ;;  %v287_v10 = vld [vmem:[#allocation8 + $0x150] sm:$0xff]  ;;  %v290_v11 = vld [vmem:[#allocation8 + $0x168] sm:$0xff]  ;;  %v289_v12 = vld [vmem:[#allocation8 + $0x160] sm:$0xff] }
  0xa2   :  { %v2156_v13 = vpack.c.bf16 %v290_v11, %v287_v10  ;;  %v292_v14 = vld [vmem:[#allocation8 + $0x178] sm:$0xff]  ;;  %v293_v25 = vld [vmem:[%s2968_s4] sm:$0x7]  ;;  %s2601_s4 = smov 64  }
  0xa3   :  { %2141 = vmatpush1.bf16.msra.mxu1 %v2140_v42  ;;  %v2186_v15 = vpack.c.bf16 %v292_v14, %v289_v12  ;;  %v1840_v17 = vld [vmem:[#allocation7] ss:$0 sm:$0xff]  ;;  %v298_v28 = vrot.slane %v293_v25, %v297_v24  ;;  %v302_v29 = vrot.slane %v293_v25, %v301_v26  ;;  %v306_v30 = vrot.slane %v293_v25, %v305_v27 }
  0xa4   :  { %2143 = vmatprep.subr.bf16.mxu1 %v2142_v45  ;;  %2169 = vmatpush3.bf16.msra.mxu0 %v2166_v41 }
  0xa5   :  { %2171 = vmatprep.subr.bf16.mxu0 %v2170_v50 }
  0xa7   :  { %2145 = vmatpush1.bf16.msra.mxu1 %v2144_v51 }
  0xa8   :  { %2147 = vmatprep.subr.bf16.mxu1 %v2146_v54  ;;  %2173 = vmatpush3.bf16.msra.mxu0 %v2170_v50 }
  0xa9   :  { %2175 = vmatprep.subr.bf16.mxu0 %v2174_v59 }
  0xab   :  { %2149 = vmatpush1.bf16.msra.mxu1 %v2148_v60 }
  0xac   :  { %2151 = vmatprep.subr.bf16.mxu1 %v2150_v63  ;;  %2177 = vmatpush3.bf16.msra.mxu0 %v2174_v59 }
  0xad   :  { %2179 = vmatprep.subr.bf16.mxu0 %v2178_v2 }
  0xaf   :  { %2153 = vmatpush1.bf16.msra.mxu1 %v2152_v3 }
  0xb0   :  { %2181 = vmatpush3.bf16.msra.mxu0 %v2178_v2  ;;  %2155 = vmatprep.subr.bf16.mxu1 %v2154_v9 }
  0xb1   :  { %2183 = vmatprep.subr.bf16.mxu0 %v2182_v6 }
  0xb3   :  { %2157 = vmatpush1.bf16.msra.mxu1 %v2156_v13 }
  0xb4   :  { %2185 = vmatpush3.bf16.msra.mxu0 %v2182_v6  ;;  %2073 = vmatprep.subr.mxu1 %v2599_v16 }
  0xb5   :  { %2187 = vmatprep.subr.bf16.mxu0 %v2186_v15 }
  0xb8   :  { %2189 = vmatpush3.bf16.msra.mxu0 %v2186_v15 }
  0xb9   :  { %2043 = vmatprep.subr.mxu0 %v2599_v16 }
 0x16e   :  { %v2007_v18 = vpop.f32.mrb[0].mxu0 }
 0x16f   :  { %v236_v19 = vpop.f32.mrb[1].mxu0  ;;  %v2803_v21 = vadd.f32 %v2007_v18, %v1840_v17 }
 0x170   :  { %v2801_v20 = vadd.f32 %v1840_v17, %v236_v19 }
 0x172   :  { %375 = vmatmul.mubr.f32.vlgmr.msra.gmra.mrb[0].mxu1 %v2801_v20  ;;  %2040 = vmatprep.mubr.f32.mxu0 %v2801_v20 }
 0x173   :  { %2041 = vmatmul.mubr.f32.vlgmr.msra.gmra.mrb[2].mxu0 %v2803_v21  ;;  %380 = vmatprep.mubr.f32.mxu1 %v2599_v16 }
 0x174   :  { %2045 = vmatprep.mubr.msk.f32.mxu0 %vm2600_vm1, %v2599_v16 }
 0x176   :  { %381 = vmatmul.mubr.f32.gmra.mrb[2].mxu1 %v2803_v21 }
 0x177   :  { %2075 = vmatprep.mubr.msk.f32.mxu1 %vm2600_vm1, %v2599_v16 }
 0x245   :  { %v376_v31 = vpop.f32.mrb[0].mxu1 }
 0x246   :  { %v377_v32 = vadd.f32 %v376_v31, %v298_v28  ;;  %v378_v33 = vpop.f32.mrb[1].mxu1  ;;  %v2042_v34 = vpop.f32.mrb[2].mxu0 }
 0x247   :  { %v379_v35 = vadd.f32 %v378_v33, %v302_v29  ;;  %v2828_v36 = vadd.f32 %v2042_v34, %v306_v30  ;;  %v453_v37 = vpop.f32.mrb[3].mxu0 }
 0x248   :  { %784 = vrot.lane.b32.xlu1 %v377_v32, %s2601_s4  ;;  %v2838_v42 = vadd.f32 %v453_v37, %v306_v30 }
 0x249   :  { %v382_v38 = vpop.f32.mrb[2].mxu1  ;;  %2044 = vmatpush3.xpose.msk.msra.mxu0 %vm462_vm2, %v379_v35 }
 0x24a   :  { %v384_v39 = vpop.f32.mrb[3].mxu1  ;;  %2048 = vmatprep.subr.mxu0 %v2599_v16  ;;  %v383_v41 = vadd.f32 %v382_v38, %v298_v28 }
 0x24b   :  { %v385_v40 = vadd.f32 %v384_v39, %v302_v29 }
 0x24c   :  { %2046 = vmatmul.mubr.msk.f32.vlgmr.msra.gmra.mrb[4].mxu0 %vm462_vm2, %v377_v32 }
 0x24d   :  { %2049 = vmatpush3.xpose.msk.msra.mxu0 %vm462_vm2, %v385_v40  ;;  %2050 = vmatprep.mubr.msk.f32.mxu0 %vm2600_vm1, %v2599_v16 }
 0x24e   :  { %2053 = vmatprep.subr.mxu0 %v2599_v16 }
 0x250   :  { %2051 = vmatmul.mubr.msk.f32.vlgmr.msra.gmra.mrb[6].mxu0 %vm462_vm2, %v383_v41 }
 0x251   :  { %2054 = vmatpush3.msra.mxu0 %v2838_v42  ;;  %2055 = vmatprep.mubr.msk.f32.mxu0 %vm2600_vm1, %v2599_v16 }
 0x252   :  { %2058 = vmatprep.subr.mxu0 %v2599_v16 }
 0x2ba   :  { %v785_v59 = vpop.permute.xlu1 %784 }
 0x31f   :  { %v535_v43 = vpop.f32.mrb[4].mxu0 }
 0x320   :  { %v2047_v44 = vpop.f32.mrb[5].mxu0  ;;  %v616_v45 = vsel %vm615_vm3, %v535_v43, -inf }
 0x321   :  { %617 = vmax.xlane.f32.xlu0 %v616_v45  ;;  %v1129_v44 = vld [vmem:[#allocation10 + $0x18] sm:$0xff] }
 0x323   :  { %v611_v46 = vpop.f32.mrb[6].mxu0 }
 0x324   :  { %v2052_v47 = vpop.f32.mrb[7].mxu0  ;;  %v619_v48 = vsel %vm615_vm3, %v611_v46, -inf }
 0x325   :  { %620 = vmax.xlane.f32.xlu0 %v619_v48  ;;  %v1131_v47 = vld [vmem:[#allocation10 + $0x28] sm:$0xff] }
 0x33b   :  { %786 = vrot.lane.b32.xlu0 %v379_v35, %s2601_s4 }
 0x3ae   :  { %v618_v49 = vpop.xlane.xlu0 %617 }
 0x3af   :  { %v622_v50 = vsub.f32 %v535_v43, %v618_v49  ;;  %v1128_v43 = vld [vmem:[#allocation10 + $0x10] sm:$0xff] }
 0x3b0   :  { %v2194_v45 = vpack.c.bf16 %v1129_v44, %v1128_v43  ;;  %v1132_v49 = vld [vmem:[#allocation10 + $0x30] sm:$0xff] }
 0x3b1   :  { %v624_v51 = vmul.f32 1.442695, %v622_v50  ;;  %v1133_v50 = vld [vmem:[#allocation10 + $0x38] sm:$0xff]  ;;  %v1277_v43 = vld [vmem:[#allocation11 + $0x50] sm:$0xff] }
 0x3b2   :  { %v621_v54 = vpop.xlane.xlu0 %620  ;;  %v1281_v44 = vld [vmem:[#allocation11 + $0x70] sm:$0xff] }
 0x3b3   :  { %2372 = vpow2.f32 %v624_v51  ;;  %v623_v55 = vsub.f32 %v611_v46, %v621_v54  ;;  %v1130_v46 = vld [vmem:[#allocation10 + $0x20] sm:$0xff]  ;;  %v2202_v51 = vpack.c.bf16 %v1133_v50, %v1132_v49  ;;  %v1286_v49 = vld [vmem:[#allocation11 + $0x98] sm:$0xff] }
 0x3b4   :  { %v2198_v48 = vpack.c.bf16 %v1131_v47, %v1130_v46  ;;  %v1288_v46 = vld [vmem:[#allocation11 + $0xa8] sm:$0xff]  ;;  %v2260_v47 = vpack.c.bf16 %v1281_v44, %v1277_v43  ;;  %v1290_v50 = vld [vmem:[#allocation11 + $0xb8] sm:$0xff] }
 0x3b5   :  { %v626_v56 = vmul.f32 1.442695, %v623_v55  ;;  %v1136_v55 = vld [vmem:[#allocation10 + $0x50] sm:$0xff]  ;;  %v1316_v43 = vld [vmem:[#allocation11 + $0x188] sm:$0xff] }
 0x3b6   :  { %v787_v3 = vpop.permute.xlu0 %786  ;;  %v1320_v44 = vld [vmem:[#allocation11 + $0x1a8] sm:$0xff] }
 0x3b7   :  { %2374 = vpow2.f32 %v626_v56  ;;  %v1137_v56 = vld [vmem:[#allocation10 + $0x58] sm:$0xff] }
 0x3bd   :  { %v2373_v52 = vpop.eup %2372 }
 0x3be   :  { %v628_v53 = vsel %vm615_vm3, %v2373_v52, 0.0 }
 0x3bf   :  { %629 = vadd.xlane.f32.xlu1 %v628_v53  ;;  %v1135_v53 = vld [vmem:[#allocation10 + $0x48] sm:$0xff] }
 0x3c1   :  { %v2375_v57 = vpop.eup %2374 }
 0x3c2   :  { %v631_v58 = vsel %vm615_vm3, %v2375_v57, 0.0 }
 0x3d0   :  { %864 = vrot.lane.b32.xlu1 %v385_v40, %s2601_s4  ;;  %v1126_v40 = vld [vmem:[#allocation10] sm:$0xff] }
 0x3f4   :  { %632 = vadd.xlane.f32.xlu1 %v631_v58  ;;  %v1138_v58 = vld [vmem:[#allocation10 + $0x60] sm:$0xff] }
 0x405   :  { %862 = vrot.lane.b32.xlu1 %v383_v41, %s2601_s4  ;;  %v1127_v41 = vld [vmem:[#allocation10 + $0x8] sm:$0xff] }
 0x44c   :  { %v630_v60 = vpop.xlane.xlu1 %629 }
 0x44d   :  { %2376 = vrcp.f32 %v630_v60 }
 0x450   :  { %v865_v63 = vpop.permute.xlu1 %864 }
 0x457   :  { %v2377_v61 = vpop.eup %2376 }
 0x458   :  { %v636_v62 = vmul.f32 %v2377_v61, %v2373_v52  ;;  %v1134_v52 = vld [vmem:[#allocation10 + $0x40] sm:$0xff]  ;;  %v1140_v61 = vld [vmem:[#allocation10 + $0x70] sm:$0xff] }
 0x459   :  { %v2206_v54 = vpack.c.bf16 %v1135_v53, %v1134_v52  ;;  %v2262_v52 = vpack.c.bf16 %v1290_v50, %v1286_v49  ;;  %v1287_v53 = vld [vmem:[#allocation11 + $0xa0] sm:$0xff] }
 0x45a   :  { %2056 = vmatmul.mubr.msk.f32.vlgmr.msra.gmra.mrb[8].mxu0 %vm615_vm3, %v636_v62  ;;  %v1141_v62 = vld [vmem:[#allocation10 + $0x78] sm:$0xff]  ;;  %v1315_v49 = vld [vmem:[#allocation11 + $0x180] sm:$0xff] }
 0x45b   :  { %2059 = vmatpush3.msra.mxu0 %v2828_v36  ;;  %2060 = vmatprep.mubr.msk.f32.mxu0 %vm2600_vm1, %v2599_v16  ;;  %v1319_v50 = vld [vmem:[#allocation11 + $0x1a0] sm:$0xff] }
 0x45c   :  { %2063 = vmatprep.subr.mxu0 %v2599_v16 }
 0x481   :  { %v633_v0 = vpop.xlane.xlu1 %632 }
 0x482   :  { %2378 = vrcp.f32 %v633_v0 }
 0x485   :  { %v863_v4 = vpop.permute.xlu1 %862 }
 0x48c   :  { %v2379_v1 = vpop.eup %2378 }
 0x48d   :  { %v637_v2 = vmul.f32 %v2379_v1, %v2375_v57  ;;  %v2210_v57 = vpack.c.bf16 %v1137_v56, %v1136_v55  ;;  %v1289_v55 = vld [vmem:[#allocation11 + $0xb0] sm:$0xff] }
 0x48f   :  { %2061 = vmatmul.mubr.msk.f32.vlgmr.msra.gmra.mrb[10].mxu0 %vm615_vm3, %v637_v2 }
 0x490   :  { %2064 = vmatpush3.xpose.msk.msra.mxu0 %vm462_vm2, %v787_v3  ;;  %2065 = vmatprep.mubr.msk.f32.mxu0 %vm2600_vm1, %v2599_v16 }
 0x491   :  { %2068 = vmatprep.subr.mxu0 %v2599_v16 }
 0x493   :  { %2066 = vmatmul.mubr.msk.f32.vlgmr.msra.gmra.mrb[12].mxu0 %vm462_vm2, %v785_v59  ;;  %v1139_v59 = vld [vmem:[#allocation10 + $0x68] sm:$0xff] }
 0x494   :  { %2069 = vmatpush3.xpose.msk.msra.mxu0 %vm462_vm2, %v865_v63  ;;  %2070 = vmatprep.mubr.msk.f32.mxu0 %vm2600_vm1, %v2599_v16  ;;  %v2214_v60 = vpack.c.bf16 %v1139_v59, %v1138_v58  ;;  %v2218_v63 = vpack.c.bf16 %v1141_v62, %v1140_v61 }
 0x495   :  { %2078 = vmatprep.subr.mxu0 %v2599_v16 }
 0x497   :  { %2071 = vmatmul.mubr.msk.f32.vlgmr.msra.gmra.mrb[14].mxu0 %vm462_vm2, %v863_v4 }
 0x498   :  { %2080 = vmatprep.mubr.msk.f32.mxu0 %vm2600_vm1, %v2599_v16 }
 0x52d   :  { %v2870_v5 = vpop.f32.mrb[8].mxu0 }
 0x52e   :  { %v2057_v6 = vpop.f32.mrb[9].mxu0 }
 0x562   :  { %v2872_v7 = vpop.f32.mrb[10].mxu0 }
 0x563   :  { %v2062_v8 = vpop.f32.mrb[11].mxu0 }
 0x566   :  { %v858_v9 = vpop.f32.mrb[12].mxu0 }
 0x567   :  { %v2067_v10 = vpop.f32.mrb[13].mxu0  ;;  %v940_v11 = vsel %vm615_vm3, %v858_v9, -inf }
 0x568   :  { %941 = vmax.xlane.f32.xlu0 %v940_v11 }
 0x56a   :  { %v936_v12 = vpop.f32.mrb[14].mxu0 }
 0x56b   :  { %v2072_v13 = vpop.f32.mrb[15].mxu0  ;;  %v943_v14 = vsel %vm615_vm3, %v936_v12, -inf }
 0x56c   :  { %944 = vmax.xlane.f32.xlu1 %v943_v14 }
 0x57d   :  { %1040 = vrot.lane.b32.xlu1 %v2828_v36, %s2601_s4 }
 0x5f5   :  { %v942_v15 = vpop.xlane.xlu0 %941 }
 0x5f6   :  { %v946_v17 = vsub.f32 %v858_v9, %v942_v15 }
 0x5f8   :  { %v948_v18 = vmul.f32 1.442695, %v946_v17 }
 0x5f9   :  { %v945_v19 = vpop.xlane.xlu1 %944 }
 0x5fa   :  { %2380 = vpow2.f32 %v948_v18  ;;  %v947_v22 = vsub.f32 %v936_v12, %v945_v19  ;;  %v1855_v12 = vld [vmem:[%s2970_s6] ss:$0 sm:$0xff] }
 0x5fc   :  { %v950_v25 = vmul.f32 1.442695, %v947_v22  ;;  %v1270_v22 = vld [vmem:[#allocation11 + $0x18] sm:$0xff] }
 0x5fd   :  { %v1041_v28 = vpop.permute.xlu1 %1040 }
 0x5fe   :  { %2382 = vpow2.f32 %v950_v25  ;;  %2079 = vmatpush3.msra.mxu0 %v1041_v28  ;;  %v1274_v28 = vld [vmem:[#allocation11 + $0x38] sm:$0xff] }
 0x604   :  { %v2381_v29 = vpop.eup %2380 }
 0x605   :  { %v952_v30 = vsel %vm615_vm3, %v2381_v29, 0.0 }
 0x606   :  { %953 = vadd.xlane.f32.xlu0 %v952_v30  ;;  %v1271_v30 = vld [vmem:[#allocation11 + $0x20] sm:$0xff] }
 0x608   :  { %v2383_v31 = vpop.eup %2382 }
 0x609   :  { %v955_v32 = vsel %vm615_vm3, %v2383_v31, 0.0 }
 0x60a   :  { %956 = vadd.xlane.f32.xlu0 %v955_v32 }
 0x620   :  { %963 = vrot.lane.b32.xlu0 %v2838_v42, %s2601_s4  ;;  %v2190_v42 = vpack.c.bf16 %v1127_v41, %v1126_v40  ;;  %v1275_v40 = vld [vmem:[#allocation11 + $0x40] sm:$0xff] }
 0x621   :  { %v1279_v41 = vld [vmem:[#allocation11 + $0x60] sm:$0xff] }
 0x693   :  { %v954_v33 = vpop.xlane.xlu0 %953 }
 0x694   :  { %2384 = vrcp.f32 %v954_v33  ;;  %v1269_v33 = vld [vmem:[#allocation11 + $0x10] sm:$0xff] }
 0x697   :  { %v957_v34 = vpop.xlane.xlu0 %956 }
 0x698   :  { %2386 = vrcp.f32 %v957_v34  ;;  %v1273_v34 = vld [vmem:[#allocation11 + $0x30] sm:$0xff] }
 0x69b   :  { %v964_v35 = vpop.permute.xlu0 %963 }
 0x69c   :  { %2074 = vmatpush3.msra.mxu1 %v964_v35  ;;  %v1276_v35 = vld [vmem:[#allocation11 + $0x48] sm:$0xff] }
 0x69d   :  { %2191 = vmatprep.subr.bf16.mxu1 %v2190_v42 }
 0x69e   :  { %v2385_v36 = vpop.eup %2384 }
 0x69f   :  { %v960_v37 = vmul.f32 %v2385_v36, %v2381_v29  ;;  %v1267_v29 = vld [vmem:[#allocation11] sm:$0xff]  ;;  %v2256_v36 = vpack.c.bf16 %v1273_v34, %v1269_v33  ;;  %v1308_v33 = vld [vmem:[#allocation11 + $0x148] sm:$0xff] }
 0x6a0   :  { %v2224_v32 = vpack.c.bf16 %v1271_v30, %v1267_v29  ;;  %v1301_v30 = vld [vmem:[#allocation11 + $0x110] sm:$0xff]  ;;  %v1312_v34 = vld [vmem:[#allocation11 + $0x168] sm:$0xff] }
 0x6a1   :  { %2076 = vmatmul.mubr.msk.f32.vlgmr.msra.gmra.mrb[4].mxu1 %vm615_vm3, %v960_v37  ;;  %v1280_v37 = vld [vmem:[#allocation11 + $0x68] sm:$0xff] }
 0x6a2   :  { %v2387_v38 = vpop.eup %2386  ;;  %2193 = vmatpush3.bf16.msra.mxu1 %v2190_v42  ;;  %v2228_v42 = vpack.c.bf16 %v1279_v41, %v1275_v40  ;;  %v1309_v40 = vld [vmem:[#allocation11 + $0x150] sm:$0xff] }
 0x6a3   :  { %v961_v39 = vmul.f32 %v2387_v38, %v2383_v31  ;;  %2195 = vmatprep.subr.bf16.mxu1 %v2194_v45  ;;  %v2254_v31 = vpack.c.bf16 %v1274_v28, %v1270_v22  ;;  %v1282_v38 = vld [vmem:[#allocation11 + $0x78] sm:$0xff]  ;;  %v1299_v22 = vld [vmem:[#allocation11 + $0x100] sm:$0xff]  ;;  %v1313_v41 = vld [vmem:[#allocation11 + $0x170] sm:$0xff] }
 0x6a5   :  { %2081 = vmatmul.mubr.msk.f32.vlgmr.msra.gmra.mrb[16].mxu0 %vm615_vm3, %v961_v39 }
 0x6a6   :  { %1417 = vmatprep.mubr.f32.mxu0 %v2599_v16  ;;  %2197 = vmatpush3.bf16.msra.mxu1 %v2194_v45  ;;  %v1284_v45 = vld [vmem:[#allocation11 + $0x88] sm:$0xff] }
 0x6a7   :  { %2199 = vmatprep.subr.bf16.mxu1 %v2198_v48 }
 0x6aa   :  { %2201 = vmatpush3.bf16.msra.mxu1 %v2198_v48  ;;  %v2230_v48 = vpack.c.bf16 %v1288_v46, %v1284_v45  ;;  %v1318_v45 = vld [vmem:[#allocation11 + $0x198] sm:$0xff] }
 0x6ab   :  { %2203 = vmatprep.subr.bf16.mxu1 %v2202_v51  ;;  %v1322_v46 = vld [vmem:[#allocation11 + $0x1b8] sm:$0xff] }
 0x6ae   :  { %2205 = vmatpush3.bf16.msra.mxu1 %v2202_v51  ;;  %v1283_v51 = vld [vmem:[#allocation11 + $0x80] sm:$0xff] }
 0x6af   :  { %2207 = vmatprep.subr.bf16.mxu1 %v2206_v54  ;;  %v2232_v56 = vpack.c.bf16 %v1287_v53, %v1283_v51  ;;  %v1317_v51 = vld [vmem:[#allocation11 + $0x190] sm:$0xff] }
 0x6b0   :  { %v1321_v53 = vld [vmem:[#allocation11 + $0x1b0] sm:$0xff] }
 0x6b2   :  { %2209 = vmatpush3.bf16.msra.mxu1 %v2206_v54  ;;  %v1285_v54 = vld [vmem:[#allocation11 + $0x90] sm:$0xff] }
 0x6b3   :  { %2211 = vmatprep.subr.bf16.mxu1 %v2210_v57 }
 0x6b6   :  { %2213 = vmatpush3.bf16.msra.mxu1 %v2210_v57  ;;  %v2264_v57 = vpack.c.bf16 %v1289_v55, %v1285_v54  ;;  %v1324_v54 = vld [vmem:[#allocation11 + $0x1c8] sm:$0xff] }
 0x6b7   :  { %2215 = vmatprep.subr.bf16.mxu1 %v2214_v60  ;;  %v1328_v55 = vld [vmem:[#allocation11 + $0x1e8] sm:$0xff] }
 0x6ba   :  { %2217 = vmatpush3.bf16.msra.mxu1 %v2214_v60 }
 0x6bb   :  { %2219 = vmatprep.subr.bf16.mxu1 %v2218_v63 }
 0x6be   :  { %2221 = vmatpush3.bf16.msra.mxu1 %v2218_v63 }
 0x6bf   :  { %2255 = vmatprep.subr.bf16.mxu1 %v2254_v31  ;;  %v1305_v31 = vld [vmem:[#allocation11 + $0x130] sm:$0xff] }
 0x774   :  { %v1035_v0 = vpop.f32.mrb[4].mxu1 }
 0x775   :  { %v2077_v1 = vpop.f32.mrb[5].mxu1 }
 0x778   :  { %v1112_v2 = vpop.f32.mrb[16].mxu0 }
 0x779   :  { %v2367_v3 = vpack.i.bf16 %v1112_v2, %v1035_v0  ;;  %v2082_v4 = vpop.f32.mrb[17].mxu0  ;;  %v1292_v2 = vld [vmem:[#allocation11 + $0xc8] sm:$0xff] }
 0x77a   :  { %v1294_v4 = vld [vmem:[#allocation11 + $0xd8] sm:$0xff] }
 0x77b   :  { %2368 = vrot.lane.b32.xlu1 %v2367_v3, %s2601_s4  ;;  %v1296_v3 = vld [vmem:[#allocation11 + $0xe8] sm:$0xff] }
 0x7ed   :  { %v2369_v6 = vpop.permute.xlu1 %2368 }
 0x7ee   :  { %v2371_v8 = vunpack.i.h.bf16 %v2369_v6  ;;  %v2370_v9 = vunpack.i.l.bf16 %v2369_v6  ;;  %v2234_v6 = vpack.c.bf16 %v1296_v3, %v1292_v2  ;;  %v1329_v2 = vld [vmem:[#allocation11 + $0x1f0] sm:$0xff] }
 0x7f0   :  { %v1124_v10 = vsel %vm462_vm2, %v2870_v5, %v2370_v9  ;;  %v1125_v11 = vsel %vm462_vm2, %v2872_v7, %v2371_v8  ;;  %v1268_v5 = vld [vmem:[#allocation11 + $0x8] sm:$0xff]  ;;  %v1298_v8 = vld [vmem:[#allocation11 + $0xf8] sm:$0xff]  ;;  %v1291_v9 = vld [vmem:[#allocation11 + $0xc0] sm:$0xff] }
 0x7f1   :  { %2115 = vmatprep.mubr.f32.mxu1 %v1124_v10  ;;  %v1272_v7 = vld [vmem:[#allocation11 + $0x28] sm:$0xff]  ;;  %v1295_v10 = vld [vmem:[#allocation11 + $0xe0] sm:$0xff] }
 0x7f2   :  { %2116 = vmatmul.mubr.f32.vlgmr.msra.gmra.mrb[6].mxu1 %v1125_v11  ;;  %v2222_v25 = vpack.c.bf16 %v1272_v7, %v1268_v5  ;;  %v2266_v11 = vpack.c.bf16 %v1298_v8, %v1294_v4  ;;  %v1306_v7 = vld [vmem:[#allocation11 + $0x138] sm:$0xff]  ;;  %v1532_v8 = vld [vmem:[#allocation13 + $0x88] sm:$0xff] }
 0x7f3   :  { %1494 = vmatprep.mubr.f32.mxu1 %v2599_v16  ;;  %2257 = vmatpush1.bf16.msra.mxu1 %v2256_v36  ;;  %v2242_v36 = vpack.c.bf16 %v1312_v34, %v1308_v33  ;;  %v1534_v34 = vld [vmem:[#allocation13 + $0x98] sm:$0xff] }
 0x7f4   :  { %2223 = vmatprep.subr.bf16.mxu0 %v2222_v25  ;;  %v1303_v25 = vld [vmem:[#allocation11 + $0x120] sm:$0xff] }
 0x7f5   :  { %2225 = vmatpush1.bf16.msra.mxu0 %v2224_v32  ;;  %v2240_v29 = vpack.c.bf16 %v1303_v25, %v1299_v22  ;;  %v2272_v32 = vpack.c.bf16 %v1305_v31, %v1301_v30  ;;  %v1857_v22 = vld [vmem:[%s2972_s8] ss:$0 sm:$0xff]  ;;  %v1547_v30 = vld [vmem:[#allocation13 + $0x100] sm:$0xff] }
 0x7f6   :  { %v1548_v31 = vld [vmem:[#allocation13 + $0x108] sm:$0xff] }
 0x8c5   :  { %v2117_v13 = vpop.f32.mrb[6].mxu1 }
 0x8c6   :  { %v1221_v14 = vadd.f32 %v2117_v13, %v1855_v12  ;;  %v1215_v15 = vpop.f32.mrb[7].mxu1  ;;  %v1293_v13 = vld [vmem:[#allocation11 + $0xd0] sm:$0xff] }
 0x8c7   :  { %v1216_v17 = vadd.f32 %v1855_v12, %v1215_v15  ;;  %v2236_v12 = vpack.c.bf16 %v1295_v10, %v1291_v9  ;;  %v1563_v9 = vld [vmem:[#allocation13 + $0x180] sm:$0xff] }
 0x8c8   :  { %v1225_v18 = vadd.f32 %v1221_v14, %v2803_v21  ;;  %v1278_v21 = vld [vmem:[#allocation11 + $0x58] sm:$0xff]  ;;  %v1297_v14 = vld [vmem:[#allocation11 + $0xf0] sm:$0xff] }
 0x8c9   :  { %v1224_v19 = vadd.f32 %v1216_v17, %v2801_v20  ;;  %v2226_v20 = vpack.c.bf16 %v1280_v37, %v1276_v35  ;;  %v2258_v39 = vpack.c.bf16 %v1282_v38, %v1278_v21  ;;  %v2268_v15 = vpack.c.bf16 %v1297_v14, %v1293_v13  ;;  %v1300_v17 = vld [vmem:[#allocation11 + $0x108] sm:$0xff]  ;;  %v1310_v35 = vld [vmem:[#allocation11 + $0x158] sm:$0xff]  ;;  %v1307_v21 = vld [vmem:[#allocation11 + $0x140] sm:$0xff] }
 0x8ca   :  { %1230 = vadd.xlane.f32.xlu0 %v1225_v18  ;;  %v1314_v37 = vld [vmem:[#allocation11 + $0x178] sm:$0xff]  ;;  %v1311_v38 = vld [vmem:[#allocation11 + $0x160] sm:$0xff] }
 0x8cb   :  { %1228 = vadd.xlane.f32.xlu1 %v1224_v19  ;;  %2227 = vmatprep.subr.bf16.mxu0 %v2226_v20  ;;  %v2274_v20 = vpack.c.bf16 %v1314_v37, %v1310_v35  ;;  %v1565_v35 = vld [vmem:[#allocation13 + $0x190] sm:$0xff] }
 0x8cc   :  { %2259 = vmatprep.subr.bf16.mxu1 %v2258_v39  ;;  %2229 = vmatpush1.bf16.msra.mxu0 %v2228_v42  ;;  %v2244_v39 = vpack.c.bf16 %v1311_v38, %v1307_v21  ;;  %v2276_v42 = vpack.c.bf16 %v1313_v41, %v1309_v40  ;;  %v1517_v40 = vld [vmem:[#allocation13 + $0x10] sm:$0xff]  ;;  %v1518_v41 = vld [vmem:[#allocation13 + $0x18] sm:$0xff] }
 0x8cd   :  { %2261 = vmatpush1.bf16.msra.mxu1 %v2260_v47  ;;  %2231 = vmatprep.subr.bf16.mxu0 %v2230_v48  ;;  %v2246_v47 = vpack.c.bf16 %v1320_v44, %v1316_v43  ;;  %v2278_v48 = vpack.c.bf16 %v1322_v46, %v1318_v45  ;;  %v1550_v44 = vld [vmem:[#allocation13 + $0x118] sm:$0xff]  ;;  %v1535_v45 = vld [vmem:[#allocation13 + $0xa0] sm:$0xff] }
 0x8ce   :  { %2263 = vmatprep.subr.bf16.mxu1 %v2262_v52  ;;  %v2248_v52 = vpack.c.bf16 %v1319_v50, %v1315_v49  ;;  %v1568_v49 = vld [vmem:[#allocation13 + $0x1a8] sm:$0xff]  ;;  %v2292_v50 = vpack.c.bf16 %v1518_v41, %v1517_v40 }
 0x8cf   :  { %v1576_v40 = vld [vmem:[#allocation13 + $0x1e8] sm:$0xff] }
 0x8d0   :  { %2233 = vmatpush1.bf16.msra.mxu0 %v2232_v56  ;;  %v2280_v56 = vpack.c.bf16 %v1321_v53, %v1317_v51  ;;  %v1520_v53 = vld [vmem:[#allocation13 + $0x28] sm:$0xff] }
 0x8d1   :  { %2265 = vmatpush1.bf16.msra.mxu1 %v2264_v57  ;;  %2235 = vmatprep.subr.bf16.mxu0 %v2234_v6  ;;  %v2250_v57 = vpack.c.bf16 %v1328_v55, %v1324_v54  ;;  %v1531_v6 = vld [vmem:[#allocation13 + $0x80] sm:$0xff] }
 0x8d2   :  { %2267 = vmatprep.subr.bf16.mxu1 %v2266_v11  ;;  %v2286_v10 = vpack.c.bf16 %v1532_v8, %v1531_v6  ;;  %v1564_v11 = vld [vmem:[#allocation13 + $0x188] sm:$0xff]  ;;  %v1553_v6 = vld [vmem:[#allocation13 + $0x130] sm:$0xff]  ;;  %v1554_v8 = vld [vmem:[#allocation13 + $0x138] sm:$0xff] }
 0x8d4   :  { %2237 = vmatpush1.bf16.msra.mxu0 %v2236_v12  ;;  %v2318_v12 = vpack.c.bf16 %v1564_v11, %v1563_v9  ;;  %v1539_v9 = vld [vmem:[#allocation13 + $0xc0] sm:$0xff] }
 0x8d5   :  { %2269 = vmatpush1.bf16.msra.mxu1 %v2268_v15  ;;  %v1571_v11 = vld [vmem:[#allocation13 + $0x1c0] sm:$0xff] }
 0x957   :  { %v1231_v58 = vpop.xlane.xlu0 %1230 }
 0x958   :  { %v1229_v59 = vpop.xlane.xlu1 %1228  ;;  %v1234_v60 = vmul.f32 0.0078125, %v1231_v58  ;;  %v1326_v58 = vld [vmem:[#allocation11 + $0x1d8] sm:$0xff] }
 0x959   :  { %v1233_v61 = vmul.f32 0.0078125, %v1229_v59  ;;  %v1330_v59 = vld [vmem:[#allocation11 + $0x1f8] sm:$0xff] }
 0x95a   :  { %v2898_v63 = vsub.f32 %v1225_v18, %v1234_v60  ;;  %v1304_v18 = vld [vmem:[#allocation11 + $0x128] sm:$0xff]  ;;  %v1323_v60 = vld [vmem:[#allocation11 + $0x1c0] sm:$0xff] }
 0x95b   :  { %v2896_v62 = vsub.f32 %v1224_v19, %v1233_v61  ;;  %v1302_v19 = vld [vmem:[#allocation11 + $0x118] sm:$0xff]  ;;  %v2238_v5 = vpack.c.bf16 %v1304_v18, %v1300_v17  ;;  %v2282_v61 = vpack.c.bf16 %v1330_v59, %v1326_v58  ;;  %v1537_v58 = vld [vmem:[#allocation13 + $0xb0] sm:$0xff] }
 0x95c   :  { %v1238_v1 = vmul.f32 %v2898_v63, %v2898_v63  ;;  %v2270_v28 = vpack.c.bf16 %v1306_v7, %v1302_v19  ;;  %v1856_v7 = vld [vmem:[%s2971_s7] ss:$0 sm:$0xff]  ;;  %v1569_v59 = vld [vmem:[#allocation13 + $0x1b0] sm:$0xff] }
 0x95d   :  { %v1237_v0 = vmul.f32 %v2896_v62, %v2896_v62  ;;  %2239 = vmatprep.subr.bf16.mxu0 %v2238_v5 }
 0x95e   :  { %2271 = vmatprep.subr.bf16.mxu1 %v2270_v28  ;;  %2241 = vmatpush1.bf16.msra.mxu0 %v2240_v29  ;;  %v1515_v28 = vld [vmem:[#allocation13] sm:$0xff]  ;;  %v1516_v29 = vld [vmem:[#allocation13 + $0x8] sm:$0xff] }
 0x95f   :  { %1239 = vadd.xlane.f32.xlu0 %v1237_v0  ;;  %2273 = vmatpush1.bf16.msra.mxu1 %v2272_v32  ;;  %v1327_v0 = vld [vmem:[#allocation11 + $0x1e0] sm:$0xff]  ;;  %v1533_v32 = vld [vmem:[#allocation13 + $0x90] sm:$0xff] }
 0x960   :  { %2243 = vmatprep.subr.bf16.mxu0 %v2242_v36  ;;  %2275 = vmatprep.subr.bf16.mxu1 %v2274_v20  ;;  %v2252_v3 = vpack.c.bf16 %v1327_v0, %v1323_v60  ;;  %v1566_v36 = vld [vmem:[#allocation13 + $0x198] sm:$0xff]  ;;  %v2288_v20 = vpack.c.bf16 %v1516_v29, %v1515_v28  ;;  %v2290_v43 = vpack.c.bf16 %v1534_v34, %v1533_v32  ;;  %v1573_v28 = vld [vmem:[#allocation13 + $0x1d0] sm:$0xff] }
 0x961   :  { %v1570_v60 = vld [vmem:[#allocation13 + $0x1b8] sm:$0xff]  ;;  %v1525_v32 = vld [vmem:[#allocation13 + $0x50] sm:$0xff] }
 0x962   :  { %2245 = vmatpush1.bf16.msra.mxu0 %v2244_v39  ;;  %v2320_v39 = vpack.c.bf16 %v1548_v31, %v1547_v30  ;;  %v1574_v29 = vld [vmem:[#allocation13 + $0x1d8] sm:$0xff] }
 0x963   :  { %1241 = vadd.xlane.f32.xlu0 %v1238_v1  ;;  %2277 = vmatpush1.bf16.msra.mxu1 %v2276_v42  ;;  %v1325_v1 = vld [vmem:[#allocation11 + $0x1d0] sm:$0xff] }
 0x964   :  { %2247 = vmatprep.subr.bf16.mxu0 %v2246_v47  ;;  %2279 = vmatprep.subr.bf16.mxu1 %v2278_v48  ;;  %v2284_v4 = vpack.c.bf16 %v1329_v2, %v1325_v1  ;;  %v1549_v42 = vld [vmem:[#allocation13 + $0x110] sm:$0xff]  ;;  %v1536_v47 = vld [vmem:[#allocation13 + $0xa8] sm:$0xff]  ;;  %v1567_v48 = vld [vmem:[#allocation13 + $0x1a0] sm:$0xff] }
 0x965   :  { %v2324_v51 = vpack.c.bf16 %v1550_v44, %v1549_v42  ;;  %v2294_v54 = vpack.c.bf16 %v1536_v47, %v1535_v45  ;;  %v2326_v55 = vpack.c.bf16 %v1568_v49, %v1567_v48  ;;  %v1521_v1 = vld [vmem:[#allocation13 + $0x30] sm:$0xff]  ;;  %v1522_v2 = vld [vmem:[#allocation13 + $0x38] sm:$0xff]  ;;  %v1527_v44 = vld [vmem:[#allocation13 + $0x60] sm:$0xff] }
 0x966   :  { %2249 = vmatpush1.bf16.msra.mxu0 %v2248_v52  ;;  %v1519_v52 = vld [vmem:[#allocation13 + $0x20] sm:$0xff]  ;;  %v1528_v45 = vld [vmem:[#allocation13 + $0x68] sm:$0xff] }
 0x967   :  { %2281 = vmatpush1.bf16.msra.mxu1 %v2280_v56  ;;  %2251 = vmatprep.subr.bf16.mxu0 %v2250_v57  ;;  %v1551_v56 = vld [vmem:[#allocation13 + $0x120] sm:$0xff]  ;;  %v1552_v57 = vld [vmem:[#allocation13 + $0x128] sm:$0xff]  ;;  %v2312_v47 = vpack.c.bf16 %v1528_v45, %v1527_v44 }
 0x968   :  { %2283 = vmatprep.subr.bf16.mxu1 %v2282_v61  ;;  %v2296_v61 = vpack.c.bf16 %v1520_v53, %v1519_v52  ;;  %v2328_v0 = vpack.c.bf16 %v1552_v57, %v1551_v56  ;;  %v1560_v48 = vld [vmem:[#allocation13 + $0x168] sm:$0xff]  ;;  %v1577_v52 = vld [vmem:[#allocation13 + $0x1f0] sm:$0xff]  ;;  %v1530_v56 = vld [vmem:[#allocation13 + $0x78] sm:$0xff] }
 0x96a   :  { %2253 = vmatpush1.bf16.msra.mxu0 %v2252_v3 }
 0x96b   :  { %2285 = vmatpush1.bf16.msra.mxu1 %v2284_v4  ;;  %2287 = vmatprep.subr.bf16.mxu0 %v2286_v10  ;;  %v2330_v4 = vpack.c.bf16 %v1570_v60, %v1569_v59  ;;  %v1540_v10 = vld [vmem:[#allocation13 + $0xc8] sm:$0xff]  ;;  %v1562_v59 = vld [vmem:[#allocation13 + $0x178] sm:$0xff] }
 0x96c   :  { %2319 = vmatprep.subr.bf16.mxu1 %v2318_v12  ;;  %v1572_v12 = vld [vmem:[#allocation13 + $0x1c8] sm:$0xff] }
 0x9ec   :  { %v1240_v13 = vpop.xlane.xlu0 %1239 }
 0x9ed   :  { %v1243_v14 = vmul.f32 0.0078125, %v1240_v13  ;;  %v2300_v13 = vpack.c.bf16 %v1522_v2, %v1521_v1 }
 0x9ef   :  { %v1245_v15 = vadd.f32 1e-05, %v1243_v14  ;;  %v2332_v14 = vpack.c.bf16 %v1554_v8, %v1553_v6 }
 0x9f0   :  { %v1242_v17 = vpop.xlane.xlu0 %1241 }
 0x9f1   :  { %2388 = vrsqrt.f32 %v1245_v15  ;;  %v1244_v18 = vmul.f32 0.0078125, %v1242_v17  ;;  %v1523_v15 = vld [vmem:[#allocation13 + $0x40] sm:$0xff]  ;;  %v1524_v17 = vld [vmem:[#allocation13 + $0x48] sm:$0xff] }
 0x9f2   :  { %v2304_v30 = vpack.c.bf16 %v1524_v17, %v1523_v15 }
 0x9f3   :  { %v1246_v19 = vadd.f32 1e-05, %v1244_v18  ;;  %v2302_v18 = vpack.c.bf16 %v1540_v10, %v1539_v9 }
 0x9f5   :  { %2390 = vrsqrt.f32 %v1246_v19  ;;  %v2334_v19 = vpack.c.bf16 %v1572_v12, %v1571_v11 }
 0x9fb   :  { %v2389_v5 = vpop.eup %2388 }
 0x9fc   :  { %v1249_v25 = vmul.f32 %v2389_v5, %v2896_v62  ;;  %v2322_v62 = vpack.c.bf16 %v1566_v36, %v1565_v35  ;;  %v1555_v5 = vld [vmem:[#allocation13 + $0x140] sm:$0xff]  ;;  %v2338_v35 = vpack.c.bf16 %v1574_v29, %v1573_v28  ;;  %v1557_v36 = vld [vmem:[#allocation13 + $0x150] sm:$0xff] }
 0x9fe   :  { %v1257_v33 = vmul.f32 %v1856_v7, %v1249_v25  ;;  %v1542_v25 = vld [vmem:[#allocation13 + $0xd8] sm:$0xff] }
 0x9ff   :  { %v2391_v37 = vpop.eup %2390 }
 0xa00   :  { %v2911_v21 = vadd.f32 %v1857_v22, %v1257_v33  ;;  %v1250_v38 = vmul.f32 %v2391_v37, %v2898_v63  ;;  %v1526_v33 = vld [vmem:[#allocation13 + $0x58] sm:$0xff] }
 0xa01   :  { %v1558_v37 = vld [vmem:[#allocation13 + $0x158] sm:$0xff]  ;;  %v2308_v41 = vpack.c.bf16 %v1526_v33, %v1525_v32 }
 0xa02   :  { %1418 = vmatmul.mubr.f32.vlgmr.msra.gmra.mrb[18].mxu0 %v2911_v21  ;;  %1495 = vmatmul.mubr.f32.vlgmr.msra.gmra.mrb[8].mxu1 %v2911_v21  ;;  %v1258_v46 = vmul.f32 %v1856_v7, %v1250_v38  ;;  %v1556_v7 = vld [vmem:[#allocation13 + $0x148] sm:$0xff]  ;;  %v1543_v38 = vld [vmem:[#allocation13 + $0xe0] sm:$0xff] }
 0xa03   :  { %1423 = vmatprep.mubr.f32.mxu0 %v2599_v16  ;;  %1500 = vmatprep.mubr.f32.mxu1 %v2599_v16  ;;  %v1538_v16 = vld [vmem:[#allocation13 + $0xb8] sm:$0xff]  ;;  %v2336_v31 = vpack.c.bf16 %v1556_v7, %v1555_v5 }
 0xa04   :  { %v2918_v63 = vadd.f32 %v1857_v22, %v1258_v46  ;;  %2289 = vmatpush3.bf16.msra.mxu0 %v2288_v20  ;;  %2321 = vmatpush3.bf16.msra.mxu1 %v2320_v39  ;;  %v2298_v3 = vpack.c.bf16 %v1538_v16, %v1537_v58  ;;  %v1541_v22 = vld [vmem:[#allocation13 + $0xd0] sm:$0xff]  ;;  %v1544_v20 = vld [vmem:[#allocation13 + $0xe8] sm:$0xff]  ;;  %v1575_v39 = vld [vmem:[#allocation13 + $0x1e0] sm:$0xff] }
 0xa05   :  { %2291 = vmatprep.subr.bf16.mxu0 %v2290_v43  ;;  %2323 = vmatprep.subr.bf16.mxu1 %v2322_v62  ;;  %v2306_v34 = vpack.c.bf16 %v1542_v25, %v1541_v22  ;;  %v2340_v43 = vpack.c.bf16 %v1558_v37, %v1557_v36  ;;  %v2310_v62 = vpack.c.bf16 %v1544_v20, %v1543_v38  ;;  %v1559_v46 = vld [vmem:[#allocation13 + $0x160] sm:$0xff]  ;;  %v1561_v16 = vld [vmem:[#allocation13 + $0x170] sm:$0xff] }
 0xa06   :  { %1424 = vmatmul.mubr.f32.gmra.mrb[20].mxu0 %v2918_v63  ;;  %1501 = vmatmul.mubr.f32.gmra.mrb[10].mxu1 %v2918_v63  ;;  %v2342_v42 = vpack.c.bf16 %v1576_v40, %v1575_v39  ;;  %v2344_v49 = vpack.c.bf16 %v1560_v48, %v1559_v46  ;;  %v2348_v60 = vpack.c.bf16 %v1562_v59, %v1561_v16 }
 0xa08   :  { %2293 = vmatpush3.bf16.msra.mxu0 %v2292_v50  ;;  %2325 = vmatpush3.bf16.msra.mxu1 %v2324_v51  ;;  %v1545_v50 = vld [vmem:[#allocation13 + $0xf0] sm:$0xff]  ;;  %v1546_v51 = vld [vmem:[#allocation13 + $0xf8] sm:$0xff] }
 0xa09   :  { %2295 = vmatprep.subr.bf16.mxu0 %v2294_v54  ;;  %2327 = vmatprep.subr.bf16.mxu1 %v2326_v55  ;;  %v2314_v53 = vpack.c.bf16 %v1546_v51, %v1545_v50  ;;  %v1578_v54 = vld [vmem:[#allocation13 + $0x1f8] sm:$0xff]  ;;  %v1529_v55 = vld [vmem:[#allocation13 + $0x70] sm:$0xff] }
 0xa0a   :  { %v2346_v57 = vpack.c.bf16 %v1578_v54, %v1577_v52  ;;  %v2316_v58 = vpack.c.bf16 %v1530_v56, %v1529_v55 }
 0xa0c   :  { %2297 = vmatpush3.bf16.msra.mxu0 %v2296_v61  ;;  %2329 = vmatpush3.bf16.msra.mxu1 %v2328_v0  ;;  %v1331_v61 = vld [vmem:[%s2974_s10] sm:$0xf]  ;;  %v1347_v0 = vsub.s32 3, %v2814_v23 }
 0xa0d   :  { %2299 = vmatprep.subr.bf16.mxu0 %v2298_v3  ;;  %2331 = vmatprep.subr.bf16.mxu1 %v2330_v4  ;;  %v1336_v1 = vrot.slane %v1331_v61, %v297_v24  ;;  %v1344_v2 = vrot.slane %v1331_v61, %v305_v27  ;;  %v1340_v3 = vrot.slane %v1331_v61, %v301_v26 }
 0xa0e   :  { %v1348_v4 = vrot.slane %v1331_v61, %v1347_v0  ;;  %v1859_v61 = vld [vmem:[%s2977_s13] ss:$0 sm:$0xff] }
 0xa10   :  { %2301 = vmatpush3.bf16.msra.mxu0 %v2300_v13  ;;  %2333 = vmatpush3.bf16.msra.mxu1 %v2332_v14 }
 0xa11   :  { %2303 = vmatprep.subr.bf16.mxu0 %v2302_v18  ;;  %2335 = vmatprep.subr.bf16.mxu1 %v2334_v19 }
 0xa14   :  { %2305 = vmatpush3.bf16.msra.mxu0 %v2304_v30  ;;  %2337 = vmatpush3.bf16.msra.mxu1 %v2336_v31 }
 0xa15   :  { %2307 = vmatprep.subr.bf16.mxu0 %v2306_v34  ;;  %2339 = vmatprep.subr.bf16.mxu1 %v2338_v35  ;;  %v1858_v34 = vld [vmem:[%s2976_s12] ss:$0 sm:$0xff] }
 0xa18   :  { %2309 = vmatpush3.bf16.msra.mxu0 %v2308_v41  ;;  %2341 = vmatpush3.bf16.msra.mxu1 %v2340_v43 }
 0xa19   :  { %2311 = vmatprep.subr.bf16.mxu0 %v2310_v62  ;;  %2343 = vmatprep.subr.bf16.mxu1 %v2342_v42 }
 0xa1c   :  { %2313 = vmatpush3.bf16.msra.mxu0 %v2312_v47  ;;  %2345 = vmatpush3.bf16.msra.mxu1 %v2344_v49 }
 0xa1d   :  { %2315 = vmatprep.subr.bf16.mxu0 %v2314_v53  ;;  %2347 = vmatprep.subr.bf16.mxu1 %v2346_v57 }
 0xa20   :  { %2317 = vmatpush3.bf16.msra.mxu0 %v2316_v58  ;;  %2349 = vmatpush3.bf16.msra.mxu1 %v2348_v60 }
 0xad5   :  { %v1419_v6 = vpop.f32.mrb[18].mxu0  ;;  %v1496_v8 = vpop.f32.mrb[8].mxu1 }
 0xad6   :  { %v1420_v9 = vadd.f32 %v1419_v6, %v1336_v1  ;;  %v1497_v10 = vadd.f32 %v1496_v8, %v1344_v2  ;;  %v1421_v11 = vpop.f32.mrb[19].mxu0  ;;  %v1498_v12 = vpop.f32.mrb[9].mxu1 }
 0xad7   :  { %v1422_v13 = vadd.f32 %v1421_v11, %v1340_v3  ;;  %v1499_v14 = vadd.f32 %v1498_v12, %v1348_v4 }
 0xad8   :  { %v1507_v24 = vmax.f32 %v1420_v9, 0.0  ;;  %v1509_v5 = vmax.f32 %v1497_v10, 0.0 }
 0xad9   :  { %v1508_v15 = vmax.f32 %v1422_v13, 0.0  ;;  %v1510_v17 = vmax.f32 %v1499_v14, 0.0  ;;  %v1425_v18 = vpop.f32.mrb[20].mxu0  ;;  %v1502_v19 = vpop.f32.mrb[10].mxu1 }
 0xada   :  { %v1426_v7 = vadd.f32 %v1425_v18, %v1336_v1  ;;  %v1503_v27 = vadd.f32 %v1502_v19, %v1344_v2  ;;  %v1427_v22 = vpop.f32.mrb[21].mxu0  ;;  %v1504_v23 = vpop.f32.mrb[11].mxu1  ;;  %v1860_v1 = vld [vmem:[%s2978_s14] ss:$0 sm:$0xff] }
 0xadb   :  { %v1428_v26 = vadd.f32 %v1427_v22, %v1340_v3  ;;  %v1505_v25 = vadd.f32 %v1504_v23, %v1348_v4  ;;  %1650 = vmatprep.mubr.f32.mxu0 %v1508_v15  ;;  %1725 = vmatprep.mubr.f32.mxu1 %v1510_v17 }
 0xadc   :  { %1651 = vmatmul.mubr.f32.vlgmr.msra.gmra.mrb[22].mxu0 %v1507_v24  ;;  %1726 = vmatmul.mubr.f32.vlgmr.msra.gmra.mrb[12].mxu1 %v1509_v5  ;;  %v1511_v30 = vmax.f32 %v1426_v7, 0.0  ;;  %v1513_v31 = vmax.f32 %v1503_v27, 0.0 }
 0xadd   :  { %v1512_v28 = vmax.f32 %v1428_v26, 0.0  ;;  %v1514_v29 = vmax.f32 %v1505_v25, 0.0  ;;  %v1861_v26 = vld [vmem:[%s2979_s15] ss:$0 sm:$0xff] }
 0xadf   :  { %1655 = vmatprep.mubr.f32.mxu0 %v1512_v28  ;;  %1730 = vmatprep.mubr.f32.mxu1 %v1514_v29  ;;  %v1862_v28 = vld [vmem:[%s2980_s16] ss:$0 sm:$0xff] }
 0xae0   :  { %1656 = vmatmul.mubr.f32.gmra.mrb[24].mxu0 %v1511_v30  ;;  %1731 = vmatmul.mubr.f32.gmra.mrb[14].mxu1 %v1513_v31 }
 0xbaf   :  { %v1953_v32 = vpop.f32.mrb[22].mxu0  ;;  %v1991_v33 = vpop.f32.mrb[12].mxu1 }
 0xbb0   :  { %v1954_v35 = vpop.f32.mrb[23].mxu0  ;;  %v1992_v36 = vpop.f32.mrb[13].mxu1 }
 0xbb1   :  { %v1955_v37 = vadd.f32 %v1954_v35, %v1953_v32  ;;  %v1993_v38 = vadd.f32 %v1992_v36, %v1991_v33 }
 0xbb3   :  { %v1653_v20 = vadd.f32 %v1955_v37, %v1858_v34  ;;  %v1956_v39 = vpop.f32.mrb[24].mxu0  ;;  %v1994_v40 = vpop.f32.mrb[14].mxu1 }
 0xbb4   :  { %v1957_v41 = vpop.f32.mrb[25].mxu0  ;;  %v1995_v43 = vpop.f32.mrb[15].mxu1 }
 0xbb5   :  { %v1728_v62 = vadd.f32 %v1993_v38, %v1653_v20  ;;  %v1958_v42 = vadd.f32 %v1957_v41, %v1956_v39  ;;  %v1996_v44 = vadd.f32 %v1995_v43, %v1994_v40 }
 0xbb7   :  { %v1658_v45 = vadd.f32 %v1958_v42, %v1858_v34  ;;  %v1736_v46 = vadd.f32 %v1728_v62, %v2911_v21 }
 0xbb9   :  { %v1733_v47 = vadd.f32 %v1996_v44, %v1658_v45  ;;  %1740 = vadd.xlane.f32.xlu1 %v1736_v46 }
 0xbbb   :  { %v1737_v48 = vadd.f32 %v1733_v47, %v2918_v63 }
 0xbbd   :  { %1742 = vadd.xlane.f32.xlu0 %v1737_v48 }
 0xc46   :  { %v1741_v49 = vpop.xlane.xlu1 %1740 }
 0xc47   :  { %v1744_v50 = vmul.f32 0.0078125, %v1741_v49 }
 0xc49   :  { %v1746_v51 = vsub.f32 %v1736_v46, %v1744_v50 }
 0xc4a   :  { %v1743_v52 = vpop.xlane.xlu0 %1742 }
 0xc4b   :  { %v1745_v53 = vmul.f32 0.0078125, %v1743_v52  ;;  %v1748_v54 = vmul.f32 %v1746_v51, %v1746_v51 }
 0xc4d   :  { %v1747_v55 = vsub.f32 %v1737_v48, %v1745_v53  ;;  %1750 = vadd.xlane.f32.xlu1 %v1748_v54 }
 0xc4f   :  { %v1749_v56 = vmul.f32 %v1747_v55, %v1747_v55 }
 0xc51   :  { %1752 = vadd.xlane.f32.xlu0 %v1749_v56 }
 0xcda   :  { %v1751_v57 = vpop.xlane.xlu1 %1750 }
 0xcdb   :  { %v1754_v58 = vmul.f32 0.0078125, %v1751_v57 }
 0xcdd   :  { %v1756_v16 = vadd.f32 1e-05, %v1754_v58 }
 0xcde   :  { %v1753_v59 = vpop.xlane.xlu0 %1752 }
 0xcdf   :  { %2392 = vrsqrt.f32 %v1756_v16  ;;  %v1755_v21 = vmul.f32 0.0078125, %v1753_v59 }
 0xce1   :  { %v1757_v60 = vadd.f32 1e-05, %v1755_v21 }
 0xce3   :  { %2394 = vrsqrt.f32 %v1757_v60 }
 0xce9   :  { %v2393_v63 = vpop.eup %2392 }
 0xcea   :  { %v1760_v0 = vmul.f32 %v2393_v63, %v1746_v51 }
 0xcec   :  { %v1768_v2 = vmul.f32 %v1859_v61, %v1760_v0 }
 0xced   :  { %v2395_v3 = vpop.eup %2394 }
 0xcee   :  { %v1776_v4 = vadd.f32 %v1860_v1, %v1768_v2  ;;  %v1761_v6 = vmul.f32 %v2395_v3, %v1747_v55 }
 0xcf0   :  { %1780 = vadd.xlane.f32.xlu1 %v1776_v4  ;;  %v1769_v8 = vmul.f32 %v1859_v61, %v1761_v6 }
 0xcf2   :  { %v1777_v9 = vadd.f32 %v1860_v1, %v1769_v8 }
 0xcf4   :  { %1782 = vadd.xlane.f32.xlu0 %v1777_v9 }
 0xd7d   :  { %v1781_v10 = vpop.xlane.xlu1 %1780 }
 0xd7e   :  { %v1784_v11 = vmul.f32 0.0078125, %v1781_v10 }
 0xd80   :  { %v1786_v12 = vsub.f32 %v1776_v4, %v1784_v11 }
 0xd81   :  { %v1783_v13 = vpop.xlane.xlu0 %1782 }
 0xd82   :  { %v1785_v14 = vmul.f32 0.0078125, %v1783_v13  ;;  %v1788_v15 = vmul.f32 %v1786_v12, %v1786_v12 }
 0xd84   :  { %v1787_v17 = vsub.f32 %v1777_v9, %v1785_v14  ;;  %1790 = vadd.xlane.f32.xlu1 %v1788_v15 }
 0xd86   :  { %v1789_v18 = vmul.f32 %v1787_v17, %v1787_v17 }
 0xd88   :  { %1792 = vadd.xlane.f32.xlu0 %v1789_v18 }
 0xe11   :  { %v1791_v19 = vpop.xlane.xlu1 %1790 }
 0xe12   :  { %v1794_v24 = vmul.f32 0.0078125, %v1791_v19 }
 0xe14   :  { %v1796_v5 = vadd.f32 1e-05, %v1794_v24 }
 0xe15   :  { %v1793_v7 = vpop.xlane.xlu0 %1792 }
 0xe16   :  { %2396 = vrsqrt.f32 %v1796_v5  ;;  %v1795_v27 = vmul.f32 0.0078125, %v1793_v7 }
 0xe18   :  { %v1797_v22 = vadd.f32 1e-05, %v1795_v27 }
 0xe1a   :  { %2398 = vrsqrt.f32 %v1797_v22 }
 0xe20   :  { %v2397_v23 = vpop.eup %2396 }
 0xe21   :  { %v1800_v25 = vmul.f32 %v2397_v23, %v1786_v12 }
 0xe23   :  { %v1808_v29 = vmul.f32 %v1861_v26, %v1800_v25 }
 0xe24   :  { %v2399_v30 = vpop.eup %2398 }
 0xe25   :  { %v1801_v31 = vmul.f32 %v2399_v30, %v1787_v17  ;;  %v1816_v32 = vadd.f32 %v1862_v28, %v1808_v29 }
 0xe27   :  { %v1809_v33 = vmul.f32 %v1861_v26, %v1801_v31  ;;  %1818 = vst [vmem:[#allocation14] sm:$0xff] %v1816_v32 }
 0xe29   :  { %v1817_v34 = vadd.f32 %v1862_v28, %v1809_v33 }
 0xe2b   :  { %1819 = vst [vmem:[#allocation14 + $0x8] sm:$0xff] %v1817_v34 }
 0xe2c   :  { %2565 = shalt.err (!%p2562_p4)
}
 0xe2d   :  { %s2996_s24 = sld [smem:[#allocation22_spill]] }
 0xe33   :  { %s2566_s5 = scalar_lea.hbm %s2996_s24, 256 }
 0xe34   :  { %p2567_p5 = scmp.ne.s32.totalorder %s2996_s24, %s2566_s5  ;;  %p2570_p6 = scmp.lt.u32.totalorder %s2566_s5, %s2996_s24 }
 0xe36   :  { %p2572_p7 = pnand %p2570_p6, %p2567_p5 }
 0xe38   :  { %2575 = shalt.err (!%p2572_p7)
}
 0xe39   :  { %1831 = dma.vmem_to_hbm [thread:$0]  %s1826_s0, 256, %s2996_s24, [#allocation4], %s2995_s3, %s2995_s3, %s2994_s29  }
 0xe3a   :  { %2584 = dma.done.wait [#allocation4], 256  }
 0xe3b   :  { %2585 = vsyncadd [#allocation4], 4294967040 }
 0xe3c   :  { %1835 = vsyncpa [#allocation3], 1 }
 0xe3d   :  { %1836 = vsyncpa [#allocation6], 1 }
 0xe3e   :  { %1837 = vsyncpa [#allocation9], 1 }
 0xe3f   :  { %1838 = vsyncpa [#allocation12], 1 }
 0xe40   :  { %1839 = vsyncpa [#allocation4], 1 }

</bundles_post_ra>
